<compile_context>
chip_gen: v5e
topology: v5e:2x2
jax: 0.10.0
libtpu: 0.0.40
codegen_flags: <defaults>
</compile_context>

<pallas_src>
import functools

import jax
import jax.numpy as jnp
from jax.experimental import pallas as pl
from jax.experimental.pallas import tpu as pltpu


# --------------------------------------------------------------------------- #
# Kernel
# --------------------------------------------------------------------------- #
def _convm_kernel(sup_ref, qry_ref, w_ref, b_ref, out_ref, *, compute_dtype):
    # sup_ref: (t_blk, way, c, shot*hw)   qry_ref: (t_blk, wq, c, hw)
    # w_ref:   (1, hw)  [VMEM, f32]       b_ref:   (1,)  [SMEM, f32]
    # out_ref: (1, t_blk, wq*way)
    t_blk, way, c, shw = sup_ref.shape
    wq = qry_ref.shape[1]
    hw = qry_ref.shape[3]
    inv_norm = 1.0 / float(hw - 1)

    bias = b_ref[0]                       # scalar conv bias from SMEM
    wrow = w_ref[...]                     # (1, hw) conv weight

    # ---- per-class covariance: ONE batched MXU contraction (shot-sum fused) ----
    sup = sup_ref[...].astype(jnp.float32)                  # (t_blk, way, c, shot*hw)
    cs = sup - jnp.mean(sup, axis=-1, keepdims=True)        # joint mean over shot*hw
    cs = cs.reshape(t_blk * way, c, shw).astype(compute_dtype)
    cov = jnp.einsum('bci,bdi->bcd', cs, cs,
                     preferred_element_type=jnp.float32) * inv_norm  # (t_blk*way, c, c)

    # ---- queries: center over the hw locations (f32) ----
    qry = qry_ref[...].astype(jnp.float32)                  # (t_blk, wq, c, hw)
    qc = qry - jnp.mean(qry, axis=-1, keepdims=True)

    # ---- projection for all (episode, query, way) in ONE batched matmul ----
    b = t_blk * wq * way
    covb = jnp.broadcast_to(cov.reshape(t_blk, 1, way, c, c).astype(compute_dtype),
                            (t_blk, wq, way, c, c)).reshape(b, c, c)
    qcb_f32 = jnp.broadcast_to(qc.reshape(t_blk, wq, 1, c, hw),
                               (t_blk, wq, way, c, hw)).reshape(b, c, hw)
    qcb = qcb_f32.astype(compute_dtype)
    m = jnp.einsum('bcd,bdl->bcl', covb, qcb,
                   preferred_element_type=jnp.float32)       # (b, c, hw) f32

    # diag(Q^T cov Q) per location, LeakyReLU(0.2), then Conv1d(k=stride=hw)
    diag = jnp.sum(m * qcb_f32, axis=1)                      # (b, hw)
    act = jnp.where(diag > 0.0, diag, 0.2 * diag)            # LeakyReLU(0.2)
    # TODO(synk): nn.Dropout is identity in eval mode; training-mode dropout
    #             (random masking + 1/(1-p) scaling) is not implemented here.
    act3 = act.reshape(t_blk, wq * way, hw)                  # leading-dim split (free)
    score = jnp.sum(act3 * wrow, axis=-1) + bias             # (t_blk, wq*way)

    out_ref[...] = score[None].astype(out_ref.dtype)         # one lane-dense block store


# --------------------------------------------------------------------------- #
# VMEM accounting / block sizing
# --------------------------------------------------------------------------- #
def _round_up(x, m):
    return (x + m - 1) // m * m


def _padded_tile_bytes(shape, dtype):
    """VMEM bytes of one tile after (sublane, lane) padding."""
    itemsize = jnp.dtype(dtype).itemsize
    sublane = {4: 8, 2: 16, 1: 32}.get(itemsize, 8)
    if len(shape) == 1:
        return _round_up(int(shape[0]), 128) * itemsize
    lead = 1
    for d in shape[:-2]:
        lead *= int(d)
    return lead * _round_up(int(shape[-2]), sublane) * _round_up(int(shape[-1]), 128) * itemsize


def _per_episode_vmem_bytes(way, shot, wq, c, hw, in_dtype, compute_dtype):
    """Conservative per-episode VMEM footprint (padded tiles; inputs x2 for
    double buffering; f32 upcast / centered copies and intermediates counted)."""
    shw = shot * hw
    f32 = jnp.float32
    total = 0
    # double-buffered input tiles (auto-pipelining keeps 2 buffers per input)
    total += 2 * _padded_tile_bytes((way, c, shw), in_dtype)
    total += 2 * _padded_tile_bytes((wq, c, hw), in_dtype)
    # f32 upcast + centered copies
    total += 2 * _padded_tile_bytes((way, c, shw), f32)
    total += 2 * _padded_tile_bytes((wq, c, hw), f32)
    # MXU operand copies (compute dtype)
    total += _padded_tile_bytes((way, c, shw), compute_dtype)
    total += _padded_tile_bytes((wq * way, c, c), compute_dtype)       # covb
    total += _padded_tile_bytes((wq * way, c, hw), compute_dtype)      # qcb
    total += _padded_tile_bytes((wq * way, c, hw), f32)                # qcb_f32
    # f32 intermediates
    total += _padded_tile_bytes((way, c, c), f32)                      # cov
    total += _padded_tile_bytes((wq * way, c, hw), f32)                # m
    total += 2 * _padded_tile_bytes((wq * way, hw), f32)               # diag / act
    return total


def _vmem_budget_and_limit():
    """Derive the Mosaic VMEM limit (and block-sizing budget) from the chip:
    ~38 MiB on v7x (64 MiB per TensorCore), ~76 MiB on v5e/v6e (128 MiB)."""
    default_cap = 64 << 20                          # most conservative (v7x per-TC)
    try:
        cap = int(getattr(pltpu.get_tpu_info(), "vmem_capacity_bytes", default_cap))
    except Exception:
        cap = default_cap
    vmem_limit = max(32 << 20, min(int(cap * 0.6), 96 << 20))
    block_budget = vmem_limit // 2                  # headroom for compiler scratch
    return block_budget, vmem_limit


def _pick_episode_block(t, per_episode_bytes, budget_bytes):
    """Largest divisor of t that fits the padded-VMEM budget, preferring an even
    number of grid steps (splits evenly across v7x's 2 TensorCores and still
    gives >=2 steps of DMA/compute overlap on single-core v5e/v6e)."""
    cap = max(1, min(t, int(budget_bytes // max(per_episode_bytes, 1))))
    divisors = [d for d in range(1, t + 1) if t % d == 0]
    fitting = [d for d in divisors if d <= cap] or [1]
    even_steps = [d for d in fitting if (t // d) % 2 == 0]
    pool = even_steps or fitting
    return max(pool)


# --------------------------------------------------------------------------- #
# Wrapper
# --------------------------------------------------------------------------- #
def convm_forward(query_feat, support_feat, conv_w, conv_b, *,
                  way_num, shot_num, n_local, compute_dtype=jnp.bfloat16):
    """query_feat: (t, wq, c, h, w), support_feat: (t, way*shot, c, h, w)."""
    t, wq, c, h, w = query_feat.shape
    ws = support_feat.shape[1]
    hw = h * w
    assert ws == way_num * shot_num
    assert n_local == hw, "Conv1d(kernel=stride=n_local) must equal h*w for the final view"

    # Support: (t, way, c, shot*hw) -- channel-major per class with all shot*hw
    # locations fused into the lane dim.  Cheap one-off HBM relayout of a small
    # tensor (done by XLA outside the kernel).
    sup = support_feat.reshape(t, way_num, shot_num, c, hw)
    sup = jnp.transpose(sup, (0, 1, 3, 2, 4)).reshape(t, way_num, c, shot_num * hw)
    # Query: natural NCHW-derived view, no transpose / no extra HBM traffic.
    qry = query_feat.reshape(t, wq, c, hw)

    w2 = conv_w.reshape(1, n_local).astype(jnp.float32)
    b1 = conv_b.reshape(1).astype(jnp.float32)

    block_budget, vmem_limit = _vmem_budget_and_limit()
    per_ep = _per_episode_vmem_bytes(way_num, shot_num, wq, c, hw,
                                     query_feat.dtype, compute_dtype)
    t_blk = _pick_episode_block(t, per_ep, block_budget)
    nblk = t // t_blk

    kernel = functools.partial(_convm_kernel, compute_dtype=compute_dtype)

    flops = 2 * t * (ws * c * c * hw + way_num * wq * c * c * hw + way_num * wq * c * hw)
    bytes_accessed = (sup.size * sup.dtype.itemsize + qry.size * qry.dtype.itemsize
                      + w2.size * 4 + b1.size * 4 + t * wq * way_num * 4)
    cost = pl.CostEstimate(flops=flops, transcendentals=0, bytes_accessed=bytes_accessed)

    out = pl.pallas_call(
        kernel,
        out_shape=jax.ShapeDtypeStruct((nblk, t_blk, wq * way_num), jnp.float32),
        grid=(nblk,),
        in_specs=[
            pl.BlockSpec((t_blk, way_num, c, shot_num * hw), lambda i: (i, 0, 0, 0)),
            pl.BlockSpec((t_blk, wq, c, hw), lambda i: (i, 0, 0, 0)),
            pl.BlockSpec((1, n_local), lambda i: (0, 0)),
            pl.BlockSpec(memory_space=pltpu.MemorySpace.SMEM),   # conv bias scalar
        ],
        out_specs=pl.BlockSpec((1, t_blk, wq * way_num), lambda i: (i, 0, 0)),
        compiler_params=pltpu.CompilerParams(
            dimension_semantics=("parallel",),
            vmem_limit_bytes=vmem_limit,
        ),
        cost_estimate=cost,
    )(sup, qry, w2, b1)
    return out.reshape(t, wq, way_num)


# --------------------------------------------------------------------------- #
# Pure-JAX reference (mirrors the PyTorch forward, eval mode)
# --------------------------------------------------------------------------- #
def convm_reference(query_feat, support_feat, conv_w, conv_b, way_num, shot_num,
                    compute_dtype=jnp.float32):
    """`compute_dtype` controls the matmul operand dtype (f32 accumulation) so the
    same function serves as an exact f32 reference or a bf16-operand reference."""
    t, wq, c, h, w = query_feat.shape
    hw = h * w
    ws = support_feat.shape[1]
    prec = jax.lax.Precision.HIGHEST

    sup = support_feat.reshape(t, ws, c, hw).transpose(0, 1, 3, 2)       # (t, ws, hw, c)
    sup = sup.reshape(t, way_num, shot_num * hw, c).astype(jnp.float32)
    sup = sup - sup.mean(axis=2, keepdims=True)
    sup_c = sup.astype(compute_dtype)
    cov = jnp.einsum('twnc,twnd->twcd', sup_c, sup_c,
                     preferred_element_type=jnp.float32, precision=prec) / (hw - 1)

    q = query_feat.reshape(t, wq, c, hw).transpose(0, 1, 3, 2).astype(jnp.float32)
    q = q - q.mean(axis=2, keepdims=True)                                 # (t, wq, hw, c)
    q_c = q.astype(compute_dtype)

    m = jnp.einsum('twcd,tqhd->tqwhc', cov.astype(compute_dtype), q_c,
                   preferred_element_type=jnp.float32, precision=prec)    # (t, wq, way, hw, c)
    diag = jnp.sum(m * q[:, :, None, :, :], axis=-1)                      # (t, wq, way, hw)
    act = jnp.where(diag > 0.0, diag, 0.2 * diag)
    w1 = conv_w.reshape(-1).astype(jnp.float32)
    return jnp.sum(act * w1, axis=-1) + conv_b.reshape(()).astype(jnp.float32)


# --------------------------------------------------------------------------- #
if __name__ == "__main__":
    t = 4
    way_num, shot_num, query_num = 2, 2, 3
    c, h, w = 16, 4, 4
    n_local = h * w                      # required so the conv output length == way_num
    wq = way_num * query_num
    ws = way_num * shot_num

    key = jax.random.PRNGKey(0)
    k1, k2, k3, k4 = jax.random.split(key, 4)
    query_feat = jax.random.normal(k1, (t, wq, c, h, w), dtype=jnp.float32)
    support_feat = jax.random.normal(k2, (t, ws, c, h, w), dtype=jnp.float32)

    # deterministic Conv1d(1, 1, kernel_size=n_local) parameter init
    bound = 1.0 / (n_local ** 0.5)
    conv_w = jax.random.uniform(k3, (1, 1, n_local), jnp.float32, -bound, bound)
    conv_b = jax.random.uniform(k4, (1,), jnp.float32, -bound, bound)

    def norm_err(a, b):
        return float(jnp.max(jnp.abs(a - b)) / (jnp.max(jnp.abs(b)) + 1e-12))

    # f32 MXU-operand path vs the module-faithful f32 reference.
    out_f32 = jax.block_until_ready(
        convm_forward(query_feat, support_feat, conv_w, conv_b,
                      way_num=way_num, shot_num=shot_num, n_local=n_local,
                      compute_dtype=jnp.float32))
    ref_f32 = convm_reference(query_feat, support_feat, conv_w, conv_b,
                              way_num, shot_num, compute_dtype=jnp.float32)
    assert out_f32.shape == (t, wq, way_num)
    assert norm_err(out_f32, ref_f32) < 2e-2, "f32 kernel mismatch vs reference"

    # Default bf16 MXU-operand path vs a reference using the same operand dtype.
    out_bf16 = jax.block_until_ready(
        convm_forward(query_feat, support_feat, conv_w, conv_b,
                      way_num=way_num, shot_num=shot_num, n_local=n_local))
    ref_bf16 = convm_reference(query_feat, support_feat, conv_w, conv_b,
                               way_num, shot_num, compute_dtype=jnp.bfloat16)
    assert norm_err(out_bf16, ref_bf16) < 2e-2, "bf16 kernel mismatch vs reference"

    print("KERNEL_OK")
</pallas_src>

<mosaic_0001>
module attributes {stable_mosaic.version = 11 : i64} {
  func.func @_convm_kernel(%arg0: i32, %arg1: memref<2x2x16x32xf32, #tpu.memory_space<vmem>>, %arg2: memref<2x6x16x16xf32, #tpu.memory_space<vmem>>, %arg3: memref<1x16xf32, #tpu.memory_space<vmem>>, %arg4: memref<1xf32, #tpu.memory_space<smem>>, %arg5: memref<1x2x12xf32, #tpu.memory_space<vmem>>) attributes {dimension_semantics = [#tpu.dimension_semantics<parallel>], iteration_bounds = array<i64: 2>, scalar_prefetch = 0 : i64, scratch_operands = 0 : i64, tpu.core_type = #tpu.core_type<tc>, window_params = [{transform_indices = @transform_0, window_bounds = array<i64: 2, 2, 16, 32>}, {transform_indices = @transform_1, window_bounds = array<i64: 2, 6, 16, 16>}, {pipeline_mode = #tpu.pipeline_mode<synchronous>, transform_indices = @transform_2, window_bounds = array<i64: 1, 16>}, {transform_indices = @transform_3, window_bounds = array<i64: 1>}, {transform_indices = @transform_4, window_bounds = array<i64: 1, 2, 12>}]} {
    %c0 = arith.constant 0 : index
    %0 = memref.load %arg4[%c0] : memref<1xf32, #tpu.memory_space<smem>>
    %c0_0 = arith.constant 0 : index
    %c0_1 = arith.constant 0 : index
    %1 = vector.load %arg3[%c0_0, %c0_1] : memref<1x16xf32, #tpu.memory_space<vmem>>, vector<1x16xf32>
    %c0_2 = arith.constant 0 : index
    %c0_3 = arith.constant 0 : index
    %c0_4 = arith.constant 0 : index
    %c0_5 = arith.constant 0 : index
    %2 = vector.load %arg1[%c0_2, %c0_3, %c0_4, %c0_5] : memref<2x2x16x32xf32, #tpu.memory_space<vmem>>, vector<2x2x16x32xf32>
    %cst = arith.constant dense<0.000000e+00> : vector<2x2x16xf32>
    %3 = vector.multi_reduction <add>, %2, %cst [3] : vector<2x2x16x32xf32> to vector<2x2x16xf32>
    %4 = vector.shape_cast %3 : vector<2x2x16xf32> to vector<2x2x16x1xf32>
    %cst_6 = arith.constant 3.200000e+01 : f32
    %5 = vector.broadcast %cst_6 : f32 to vector<2x2x16x1xf32>
    %6 = arith.divf %4, %5 : vector<2x2x16x1xf32>
    %7 = vector.broadcast %6 : vector<2x2x16x1xf32> to vector<2x2x16x32xf32>
    %8 = arith.subf %2, %7 : vector<2x2x16x32xf32>
    %9 = vector.shape_cast %8 : vector<2x2x16x32xf32> to vector<4x16x32xf32>
    "tpu.trace_start"() <{level = 10 : i32, message = "bci,bdi->bcd"}> : () -> ()
    %cst_7 = arith.constant dense<0.000000e+00> : vector<4x16x16xf32>
    %10 = tpu.matmul %9, %9, %cst_7 {dimension_numbers = #tpu.dot_dimension_numbers<[2], [2], [1], [1], [0, 0, 0, 1, 1, 1], [0], [0]>} : vector<4x16x32xf32>, vector<4x16x32xf32>, vector<4x16x16xf32> -> vector<4x16x16xf32>
    "tpu.trace_stop"() : () -> ()
    %cst_8 = arith.constant 0.0666666701 : f32
    %11 = vector.broadcast %cst_8 : f32 to vector<4x16x16xf32>
    %12 = arith.mulf %10, %11 : vector<4x16x16xf32>
    %c0_9 = arith.constant 0 : index
    %c0_10 = arith.constant 0 : index
    %c0_11 = arith.constant 0 : index
    %c0_12 = arith.constant 0 : index
    %13 = vector.load %arg2[%c0_9, %c0_10, %c0_11, %c0_12] : memref<2x6x16x16xf32, #tpu.memory_space<vmem>>, vector<2x6x16x16xf32>
    %cst_13 = arith.constant dense<0.000000e+00> : vector<2x6x16xf32>
    %14 = vector.multi_reduction <add>, %13, %cst_13 [3] : vector<2x6x16x16xf32> to vector<2x6x16xf32>
    %15 = vector.shape_cast %14 : vector<2x6x16xf32> to vector<2x6x16x1xf32>
    %cst_14 = arith.constant 1.600000e+01 : f32
    %16 = vector.broadcast %cst_14 : f32 to vector<2x6x16x1xf32>
    %17 = arith.divf %15, %16 : vector<2x6x16x1xf32>
    %18 = vector.broadcast %17 : vector<2x6x16x1xf32> to vector<2x6x16x16xf32>
    %19 = arith.subf %13, %18 : vector<2x6x16x16xf32>
    %20 = vector.shape_cast %12 : vector<4x16x16xf32> to vector<2x1x2x16x16xf32>
    %21 = vector.shape_cast %20 : vector<2x1x2x16x16xf32> to vector<2x1x2x16x16xf32>
    %22 = vector.broadcast %21 : vector<2x1x2x16x16xf32> to vector<2x6x2x16x16xf32>
    %23 = vector.shape_cast %22 : vector<2x6x2x16x16xf32> to vector<24x16x16xf32>
    %24 = vector.shape_cast %19 : vector<2x6x16x16xf32> to vector<2x6x1x16x16xf32>
    %25 = vector.shape_cast %24 : vector<2x6x1x16x16xf32> to vector<2x6x1x16x16xf32>
    %26 = vector.broadcast %25 : vector<2x6x1x16x16xf32> to vector<2x6x2x16x16xf32>
    %27 = vector.shape_cast %26 : vector<2x6x2x16x16xf32> to vector<24x16x16xf32>
    "tpu.trace_start"() <{level = 10 : i32, message = "bcd,bdl->bcl"}> : () -> ()
    %cst_15 = arith.constant dense<0.000000e+00> : vector<24x16x16xf32>
    %28 = tpu.matmul %23, %27, %cst_15 {dimension_numbers = #tpu.dot_dimension_numbers<[2], [1], [1], [2], [0, 0, 0, 1, 1, 2], [0], [0]>} : vector<24x16x16xf32>, vector<24x16x16xf32>, vector<24x16x16xf32> -> vector<24x16x16xf32>
    "tpu.trace_stop"() : () -> ()
    %29 = arith.mulf %28, %27 : vector<24x16x16xf32>
    %cst_16 = arith.constant dense<0.000000e+00> : vector<24x16xf32>
    %30 = vector.multi_reduction <add>, %29, %cst_16 [1] : vector<24x16x16xf32> to vector<24x16xf32>
    %cst_17 = arith.constant 0.000000e+00 : f32
    %31 = vector.broadcast %cst_17 : f32 to vector<24x16xf32>
    %32 = arith.cmpf ogt, %30, %31 : vector<24x16xf32>
    %cst_18 = arith.constant 2.000000e-01 : f32
    %33 = vector.broadcast %cst_18 : f32 to vector<24x16xf32>
    %34 = arith.mulf %33, %30 : vector<24x16xf32>
    %35 = arith.select %32, %30, %34 : vector<24x16xi1>, vector<24x16xf32>
    %36 = vector.shape_cast %35 : vector<24x16xf32> to vector<2x12x16xf32>
    %37 = vector.shape_cast %1 : vector<1x16xf32> to vector<1x1x16xf32>
    %38 = vector.broadcast %37 : vector<1x1x16xf32> to vector<2x12x16xf32>
    %39 = arith.mulf %36, %38 : vector<2x12x16xf32>
    %cst_19 = arith.constant dense<0.000000e+00> : vector<2x12xf32>
    %40 = vector.multi_reduction <add>, %39, %cst_19 [2] : vector<2x12x16xf32> to vector<2x12xf32>
    %41 = vector.broadcast %0 : f32 to vector<2x12xf32>
    %42 = arith.addf %40, %41 : vector<2x12xf32>
    %43 = vector.shape_cast %42 : vector<2x12xf32> to vector<1x2x12xf32>
    %c0_20 = arith.constant 0 : index
    %c0_21 = arith.constant 0 : index
    %c0_22 = arith.constant 0 : index
    %44 = vector.load %arg5[%c0_20, %c0_21, %c0_22] : memref<1x2x12xf32, #tpu.memory_space<vmem>>, vector<1x2x12xf32>
    tpu.vector_store %arg5[%c0_20, %c0_21, %c0_22], %43 {strides = array<i32>} : memref<1x2x12xf32, #tpu.memory_space<vmem>>, vector<1x2x12xf32>,
    return
  }
  func.func @transform_0(%arg0: i32) -> (i32, i32, i32, i32) {
    %c0_i32 = arith.constant 0 : i32
    %c0_i32_0 = arith.constant 0 : i32
    %c0_i32_1 = arith.constant 0 : i32
    %c0_i32_2 = arith.constant 0 : i32
    return %arg0, %c0_i32, %c0_i32_0, %c0_i32_1 : i32, i32, i32, i32
  }
  func.func @transform_1(%arg0: i32) -> (i32, i32, i32, i32) {
    %c0_i32 = arith.constant 0 : i32
    %c0_i32_0 = arith.constant 0 : i32
    %c0_i32_1 = arith.constant 0 : i32
    %c0_i32_2 = arith.constant 0 : i32
    return %arg0, %c0_i32, %c0_i32_0, %c0_i32_1 : i32, i32, i32, i32
  }
  func.func @transform_2(%arg0: i32) -> (i32, i32) {
    %c0_i32 = arith.constant 0 : i32
    %c0_i32_0 = arith.constant 0 : i32
    %c0_i32_1 = arith.constant 0 : i32
    return %c0_i32, %c0_i32_0 : i32, i32
  }
  func.func @transform_3(%arg0: i32) -> i32 {
    %c0_i32 = arith.constant 0 : i32
    %c0_i32_0 = arith.constant 0 : i32
    return %c0_i32 : i32
  }
  func.func @transform_4(%arg0: i32) -> (i32, i32, i32) {
    %c0_i32 = arith.constant 0 : i32
    %c0_i32_0 = arith.constant 0 : i32
    %c0_i32_1 = arith.constant 0 : i32
    return %arg0, %c0_i32, %c0_i32_0 : i32, i32, i32
  }
}

</mosaic_0001>

<bundles_post_ra>
// kernel: tpu_custom_call.1
= control target key start
LH: loop header
LB: loop body
LE: loop exit
PB: predicated region body
PF: predicated region fallthrough
CT: control target
= control target key end

     0   :  { %s2842_s0 = inlined_call_operand.hbm [shape: f32[4,2,16,32], index: 0, kind: input, shape index: {}]   ;;  %s2843_s1 = inlined_call_operand.hbm [shape: f32[4,6,16,16], index: 1, kind: input, shape index: {}]   ;;  %s2844_s2 = inlined_call_operand.vmem [shape: f32[1,16], index: 2, kind: input, shape index: {}]   ;;  %s2845_s3 = inlined_call_operand.<no memory space> [shape: f32[1], index: 3, kind: input, shape index: {}]   ;;  %s2846_s4 = inlined_call_operand.hbm [shape: f32[2,2,12], index: 4, kind: output, shape index: {}]  }
   0x1   :  { %2847 = sst [smem:[#allocation13_spill]] %s2842_s0 }
   0x2   :  { %9 = sst [smem:[#allocation2]] %s2845_s3 }
   0x3   :  { %10 = vsyncpa [#allocation4], 0 }
   0x4   :  { %12 = vsyncpa [#allocation4 + $0x1], 0 }
   0x5   :  { %13 = vsyncpa [#allocation7], 0 }
   0x6   :  { %15 = vsyncpa [#allocation7 + $0x1], 0 }
   0x7   :  { %16 = vsyncpa [#allocation5], 0 }
   0x8   :  { %18 = vsyncpa [#allocation5 + $0x1], 0  ;;  %s2068_s17 = smov 0   ;;  %s2070_s18 = smov 0  }
   0x9   :  { %s2072_s19 = smov 0   ;;  %s2074_s20 = smov 0  }
   0xa LB: > { %s2089_s3 = sadd.s32 4294967295, %s2034_s20   ;;  %s1758_s21 = sadd.s32 4294967294, %s2034_s20   ;;  %s2034_s20 = sphi %s2074_s20, %s2861_s20   ;;  %s2030_s19 = sphi %s2072_s19, %s2860_s19   ;;  %s2026_s18 = sphi %s2070_s18, %s2859_s18   ;;  %s2022_s17 = sphi %s2068_s17, %s2858_s17  }
   0xb   : > { %s2093_s22 = sadd.s32 1, %s2034_s20   ;;  %s31_s23 = sadd.s32 1, %s2030_s19 }
   0xc   : > { %s28_s24 = ssub.s32 %s2034_s20, %s2093_s22  ;;  %p38_p0 = scmp.ne.s32.totalorder %s2030_s19, %s2026_s18 }
   0xd   : > { %p29_p1 = scmp.eq.s32.totalorder %s28_s24, 0  ;;  %p39_p2 = scmp.eq.s32.totalorder %s2034_s20, 0 }
   0xe   : > { %p44_p3 = scmp.ne.s32.totalorder %s2026_s18, %s2022_s17  ;;  %p45_p4 = scmp.eq.s32.totalorder %s2089_s3, 0 }
   0xf   : > { %s2105_s25 = scalar_select %p29_p1, %s2030_s19, %s31_s23  }
  0x10   : > { %p2107_p5 = por %p39_p2, %p38_p0  ;;  %p2111_p6 = por %p45_p4, %p44_p3 }
  0x11   : > { %2848 = sst [smem:[#allocation12_spill]] %s2105_s25  ;;  %p136_p7 = scmp.eq.s32.totalorder %s2089_s3, 1 }
  0x12   : > { %p142_p8 = scmp.eq.s32.totalorder %s1758_s21, 1  ;;  %p1861_p10 = scmp.lt.s32.totalorder %s2034_s20, 2 }
  0x13   : > { %p2118_p11 = por %p136_p7, %p38_p0  ;;  %s2127_s30 = sand.u32 1, %s2030_s19  }
  0x14   : > { %p2122_p12 = por %p142_p8, %p44_p3  ;;  %s1840_s5 = sshll.u32 %s2034_s20, 6 }
  0x15   : > { %s1761_s6 = sshll.u32 %s2127_s30, 6  ;;  %s2853_s0 = sld [smem:[#allocation13_spill]] }
  0x16   : > { %s172_s11 = scalar_lea.vmem [#allocation3], %s1761_s6  ;;  %p2136_p13 = pnand %p1861_p10, %p2107_p5 }
  0x17   : > { %s181_s12 = sshll.u32 %s172_s11, 4  ;;  %p1768_p0 = scmp.ge.s32.totalorder %s2034_s20, 1  ;;  %s182_s12 = int_to_ptr.vmem [resolvable:$true] %s181_s12 }
  0x18   : > { %p212_p1 = scmp.lt.s32.totalorder %s2034_s20, 3  ;;  %s169_s14 = scalar_lea.sflag [#allocation4], %s2127_s30 }
  0x19   : > { %p1908_p3 = pneg %p2136_p13 }
  0x1b   : > { %s178_s9 = scalar_lea.hbm %s2853_s0, %s1840_s5  ;;  %s1911_s24 = scalar_lea.hbm %s2853_s0, 128 }
  0x1c   : > { %s179_s10 = sshll.u32 %s178_s9, 4  ;;  %s180_s10 = int_to_ptr.hbm [resolvable:$true] %s179_s10 }
  0x1d   : > { %s1904_s15 = sshra.s32 %s180_s10, 4  ;;  %s1905_s15 = int_to_ptr.hbm [resolvable:$true] %s1904_s15 }
  0x1e   : > { %s1906_s16 = scalar_lea.hbm %s1905_s15, 64  ;;  %p1912_p5 = scmp.lt.s32.totalorder %s1905_s15, %s2853_s0 }
  0x1f   : > { %p1907_p2 = scmp.ne.s32.totalorder %s1905_s15, %s1906_s16  ;;  %p1913_p8 = scmp.lt.s32.totalorder %s1911_s24, %s1906_s16 }
  0x21   : > { %p1909_p4 = pnand %p1908_p3, %p1907_p2  ;;  %p1914_p10 = por %p1913_p8, %p1912_p5 }
  0x23   : > { %p1910_p7 = pneg %p1909_p4 }
  0x25   : > { %p1915_p9 = pnand %p1914_p10, %p1910_p7 }
  0x27   : > { %1918 = shalt.err (!%p1915_p9)
}
  0x28   : > { %s2036_s6 = smov 128   ;;  %s2037_s7 = smov 8  }
  0x29   : > { %1853 = dma.hbm_to_vmem [thread:$0]  (!%p2136_p13), %s180_s10, 1024, %s182_s12, %s169_s14, %s2036_s6, %s2036_s6, %s2037_s7  }
  0x2a   : > { %p2160_p2 = pnand %p1768_p0, %p212_p1  ;;  %s1841_s9 = smul.u32 192, %s2127_s30 }
  0x2b   : > { %s1842_s11 = smul.u32 192, %s2034_s20  ;;  %s192_s5 = scalar_lea.sflag [#allocation7], %s2127_s30 }
  0x2c   : > { %s195_s23 = scalar_lea.vmem [#allocation6], %s1841_s9  ;;  %s1941_s25 = scalar_lea.hbm %s2843_s1, 384 }
  0x2d   : > { %s201_s21 = scalar_lea.hbm %s2843_s1, %s1842_s11  ;;  %s204_s24 = sshll.u32 %s195_s23, 4  ;;  %s205_s24 = int_to_ptr.vmem [resolvable:$true] %s204_s24 }
  0x2e   : > { %s202_s26 = sshll.u32 %s201_s21, 4  ;;  %s203_s26 = int_to_ptr.hbm [resolvable:$true] %s202_s26 }
  0x2f   : > { %s1934_s0 = sshra.s32 %s203_s26, 4  ;;  %s1935_s0 = int_to_ptr.hbm [resolvable:$true] %s1934_s0 }
  0x30   : > { %s1936_s10 = scalar_lea.hbm %s1935_s0, 192  ;;  %p1942_p4 = scmp.lt.s32.totalorder %s1935_s0, %s2843_s1 }
  0x31   : > { %p1937_p9 = scmp.ne.s32.totalorder %s1935_s0, %s1936_s10  ;;  %p1943_p7 = scmp.lt.s32.totalorder %s1941_s25, %s1936_s10 }
  0x33   : > { %p1939_p0 = pnand %p1937_p9, %p1908_p3  ;;  %p1944_p5 = por %p1943_p7, %p1942_p4 }
  0x35   : > { %p1940_p1 = pneg %p1939_p0 }
  0x37   : > { %p1945_p8 = pnand %p1944_p5, %p1940_p1 }
  0x39   : > { %1948 = shalt.err (!%p1945_p8)
}
  0x3a   : > { %1856 = dma.hbm_to_vmem [thread:$0]  (!%p2136_p13), %s203_s26, 3072, %s205_s24, %s192_s5, %s2036_s6, %s2036_s6, %s2037_s7  }
  0x3b   : > { %216 = sbr.rel (%p2160_p2) target bundleno = 707 (0x2c3), region = 36  ;;  %s2184_s30 = sand.u32 (!%p2160_p2), 1, %s2026_s18  }
  0x3c   : > { %s1769_s9 = sshll.u32 (!%p2160_p2), %s2184_s30, 6  ;;  %s219_s16 = scalar_lea.sflag (!%p2160_p2), [#allocation4], %s2184_s30 }
  0x3d   : > { %s222_s21 = scalar_lea.vmem (!%p2160_p2), [#allocation3], %s1769_s9 }
  0x40   : > { %2009 = dma.done.wait (%p2111_p6), %s219_s16, 1024  }
  0x41   : > { %2011 = vsyncadd (%p2111_p6), %s219_s16, 4294966272  ;;  %s1843_s0 = smul.u32 192, %s2184_s30  ;;  %s229_s25 = scalar_lea.sflag [#allocation7], %s2184_s30 }
  0x43   : > { %s2194_s13 = scalar_lea.vmem [#allocation6], %s1843_s0 }
  0x44   : > { %2013 = dma.done.wait (%p2111_p6), %s229_s25, 3072  }
  0x45   : > { %2015 = vsyncadd (%p2111_p6), %s229_s25, 4294964224  ;;  %vm275_vm0 = vcmask 261120   ;;  %v2200_v0 = vld [vmem:[%s222_s21 + $0x8] sm:$0xff]  ;;  %v2202_v1 = vld [vmem:[%s222_s21] sm:$0xff]  ;;  %v2038_v16 = vmov 32.0   ;;  %vm471_vm1 = vcmask 130048  }
  0x46   : > { %v279_v2 = vsel %vm275_vm0, %v2200_v0, 0.0  ;;  %v276_v3 = vsel %vm275_vm0, %v2202_v1, 0.0  ;;  %v2208_v4 = vld [vmem:[%s222_s21 + $0x28] sm:$0xff]  ;;  %v2212_v6 = vld [vmem:[%s222_s21 + $0x18] sm:$0xff]  ;;  %v2214_v7 = vld [vmem:[%s222_s21 + $0x10] sm:$0xff]  ;;  %1900 = vrcp.f32 %v2038_v16  ;;  %vm1563_vm7 = vcmask 1041409  }
  0x47   : > { %280 = vadd.xlane.f32.xlu0 %v279_v2  ;;  %277 = vadd.xlane.f32.xlu1 %v276_v3  ;;  %v291_v5 = vsel %vm275_vm0, %v2208_v4, 0.0  ;;  %v2216_v8 = vld [vmem:[%s222_s21 + $0x38] sm:$0xff]  ;;  %v285_v9 = vsel %vm275_vm0, %v2212_v6, 0.0  ;;  %v282_v10 = vsel %vm275_vm0, %v2214_v7, 0.0  ;;  %v2224_v12 = vld [vmem:[%s222_s21 + $0x20] sm:$0xff]  ;;  %v2226_v13 = vld [vmem:[%s222_s21 + $0x30] sm:$0xff] }
  0x48   : > { %292 = vadd.xlane.f32.xlu2 %v291_v5  ;;  %v297_v11 = vsel %vm275_vm0, %v2216_v8, 0.0  ;;  %v288_v14 = vsel %vm275_vm0, %v2224_v12, 0.0  ;;  %v294_v15 = vsel %vm275_vm0, %v2226_v13, 0.0  ;;  %v2233_v17 = vld [vmem:[%s2194_s13 + $0x18] sm:$0xff]  ;;  %v2238_v20 = vld [vmem:[%s2194_s13 + $0x8] sm:$0xff]  ;;  %v2243_v23 = vld [vmem:[%s2194_s13] sm:$0xff] }
  0x49   : > { %v481_v18 = vsel %vm471_vm1, %v2233_v17, 0.0  ;;  %v475_v22 = vsel %vm471_vm1, %v2238_v20, 0.0  ;;  %v2246_v24 = vld [vmem:[%s2194_s13 + $0x10] sm:$0xff]  ;;  %v472_v26 = vsel %vm471_vm1, %v2243_v23, 0.0  ;;  %v2253_v28 = vld [vmem:[%s2194_s13 + $0x38] sm:$0xff]  ;;  %v2258_v32 = vld [vmem:[%s2194_s13 + $0x28] sm:$0xff] }
  0x4a   : > { %v478_v27 = vsel %vm471_vm1, %v2246_v24, 0.0  ;;  %v493_v30 = vsel %vm471_vm1, %v2253_v28, 0.0  ;;  %v2261_v33 = vld [vmem:[%s2194_s13 + $0x30] sm:$0xff]  ;;  %v487_v34 = vsel %vm471_vm1, %v2258_v32, 0.0  ;;  %v2266_v35 = vld [vmem:[%s2194_s13 + $0x20] sm:$0xff]  ;;  %v2273_v41 = vld [vmem:[%s2194_s13 + $0x58] sm:$0xff] }
  0x4b   : > { %v490_v36 = vsel %vm471_vm1, %v2261_v33, 0.0  ;;  %v484_v40 = vsel %vm471_vm1, %v2266_v35, 0.0  ;;  %v2276_v45 = vld [vmem:[%s2194_s13 + $0x50] sm:$0xff]  ;;  %v505_v48 = vsel %vm471_vm1, %v2273_v41, 0.0  ;;  %v2287_v52 = vld [vmem:[%s2194_s13 + $0x48] sm:$0xff]  ;;  %v2293_v56 = vld [vmem:[%s2194_s13 + $0x40] sm:$0xff] }
  0x4c   : > { %v1901_v19 = vpop.eup %1900  ;;  %v502_v50 = vsel %vm471_vm1, %v2276_v45, 0.0  ;;  %v499_v55 = vsel %vm471_vm1, %v2287_v52, 0.0  ;;  %v2297_v60 = vld [vmem:[%s2194_s13 + $0x78] sm:$0xff]  ;;  %v496_v63 = vsel %vm471_vm1, %v2293_v56, 0.0  ;;  %v2309_v3 = vld [vmem:[%s2194_s13 + $0x70] sm:$0xff]  ;;  %vm1566_vm10 = vcmask 1042434  }
  0x4d   : > { %v301_v21 = vmul.f32 32.0, %v1901_v19  ;;  %vm305_vm2 = vweird.f32 %v1901_v19  ;;  %vm1569_vm11 = vcmask 1043459   ;;  %vm1572_vm13 = vcmask 1044484   ;;  %s265_s7 = sld [smem:[#allocation2]]  ;;  %s1770_s8 = sshll.u32 %s2184_s30, 1 }
  0x4e   : > { %vm1575_vm15 = vcmask 1045509   ;;  %s1836_s23 = sshll.u32 %s2089_s3, 1  ;;  %s262_s10 = scalar_lea.vmem [#allocation8], %s1770_s8 }
  0x4f   : > { %286 = vadd.xlane.f32.xlu0 %v285_v9  ;;  %283 = vadd.xlane.f32.xlu1 %v282_v10  ;;  %v302_v25 = vsub.f32 1.0, %v301_v21  ;;  %v2319_v10 = vld [vmem:[%s2194_s13 + $0x60] sm:$0xff]  ;;  %s1660_s5 = scalar_lea.hbm %s2846_s4, %s1836_s23  ;;  %s1662_s12 = sshll.u32 %s262_s10, 4  ;;  %s1663_s12 = int_to_ptr.vmem [resolvable:$true] %s1662_s12 }
  0x50   : > { %298 = vadd.xlane.f32.xlu2 %v297_v11  ;;  %v508_v16 = vsel %vm471_vm1, %v2319_v10, 0.0  ;;  %s1664_s14 = sshll.u32 %s1660_s5, 4  ;;  %s1650_s3 = scalar_lea.sflag [#allocation5], %s2184_s30  ;;  %s1665_s14 = int_to_ptr.hbm [resolvable:$true] %s1664_s14 }
  0x51   : > { %v303_v29 = vmul.f32 %v1901_v19, %v302_v25  ;;  %v2350_v25 = vld [vmem:[%s2194_s13 + $0x80] sm:$0xff]  ;;  %s1978_s15 = sshra.s32 %s1665_s14, 4  ;;  %s1984_s21 = scalar_lea.hbm %s2846_s4, 4  ;;  %s1979_s15 = int_to_ptr.hbm [resolvable:$true] %s1978_s15 }
  0x52   : > { %s1980_s11 = scalar_lea.hbm %s1979_s15, 2  ;;  %p1985_p10 = scmp.lt.s32.totalorder %s1979_s15, %s2846_s4 }
  0x53   : > { %v304_v31 = vadd.f32 %v1901_v19, %v303_v29  ;;  %v2360_v29 = vld [vmem:[%s2194_s13 + $0xb0] sm:$0xff]  ;;  %p1981_p6 = scmp.ne.s32.totalorder %s1979_s15, %s1980_s11  ;;  %p1986_p2 = scmp.lt.s32.totalorder %s1984_s21, %s1980_s11 }
  0x55   : > { %v306_v37 = vsel %vm305_vm2, %v1901_v19, %v304_v31  ;;  %v2342_v19 = vld [vmem:[%s2194_s13 + $0x88] sm:$0xff]  ;;  %v538_v31 = vsel %vm471_vm1, %v2360_v29, 0.0  ;;  %vm1578_vm2 = vcmask 1046534   ;;  %p1982_p13 = pnand %p1981_p6, %p2118_p11  ;;  %p1987_p9 = por %p1986_p2, %p1985_p10 }
  0x57   : > { %289 = vadd.xlane.f32.xlu0 %v288_v14  ;;  %295 = vadd.xlane.f32.xlu1 %v294_v15  ;;  %p1983_p3 = pneg %p1982_p13 }
  0x58   : > { %482 = vadd.xlane.f32.xlu2 %v481_v18  ;;  %v2339_v18 = vld [vmem:[%s2194_s13 + $0x90] sm:$0xff] }
  0x59   : > { %v526_v21 = vsel %vm471_vm1, %v2339_v18, 0.0  ;;  %p1988_p0 = pnand %p1987_p9, %p1983_p3 }
  0x5f   : > { %476 = vadd.xlane.f32.xlu1 %v475_v22  ;;  %479 = vadd.xlane.f32.xlu0 %v478_v27  ;;  %v523_v22 = vsel %vm471_vm1, %v2342_v19, 0.0  ;;  %v2357_v27 = vld [vmem:[%s2194_s13 + $0xb8] sm:$0xff] }
  0x60   : > { %473 = vadd.xlane.f32.xlu2 %v472_v26  ;;  %v520_v26 = vsel %vm471_vm1, %v2350_v25, 0.0 }
  0x67   : > { %494 = vadd.xlane.f32.xlu0 %v493_v30  ;;  %491 = vadd.xlane.f32.xlu1 %v490_v36  ;;  %v541_v30 = vsel %vm471_vm1, %v2357_v27, 0.0 }
  0x68   : > { %488 = vadd.xlane.f32.xlu2 %v487_v34  ;;  %v2367_v34 = vld [vmem:[%s2194_s13 + $0xa8] sm:$0xff] }
  0x69   : > { %v535_v36 = vsel %vm471_vm1, %v2367_v34, 0.0 }
  0x6f   : > { %485 = vadd.xlane.f32.xlu0 %v484_v40  ;;  %506 = vadd.xlane.f32.xlu1 %v505_v48 }
  0x70   : > { %503 = vadd.xlane.f32.xlu2 %v502_v50 }
  0x77   : > { %500 = vadd.xlane.f32.xlu0 %v499_v55  ;;  %497 = vadd.xlane.f32.xlu1 %v496_v63 }
  0xba   : > { %v281_v38 = vpop.xlane.xlu0 %280  ;;  %v278_v39 = vpop.xlane.xlu1 %277 }
  0xbb   : > { %v308_v42 = vmul.f32 %v306_v37, %v281_v38  ;;  %v307_v43 = vmul.f32 %v306_v37, %v278_v39  ;;  %v293_v44 = vpop.xlane.xlu2 %292  ;;  %v2039_v39 = vmov 16.0  }
  0xbc   : > { %v312_v46 = vmul.f32 %v306_v37, %v293_v44  ;;  %1902 = vrcp.f32 %v2039_v39 }
  0xbd   : > { %v316_v47 = vsub.f32 %v2200_v0, %v308_v42  ;;  %v315_v51 = vsub.f32 %v2202_v1, %v307_v43  ;;  %v517_v1 = vsel %vm471_vm1, %v2297_v60, 0.0 }
  0xbe   : > { %v320_v49 = vsub.f32 %v2208_v4, %v312_v46  ;;  %518 = vadd.xlane.f32.xlu2 %v517_v1 }
  0xbf   : > { %1771 = vmatpush.xpose.msk.msra.mxu0 %vm275_vm0, %v316_v47 }
  0xc0   : > { %1779 = vmatpush.xpose.msk.msra.mxu2 %vm275_vm0, %v320_v49 }
  0xc2   : > { %v287_v53 = vpop.xlane.xlu0 %286  ;;  %v284_v54 = vpop.xlane.xlu1 %283 }
  0xc3   : > { %v310_v57 = vmul.f32 %v306_v37, %v287_v53  ;;  %1772 = vmatpush.xpose.msk.msra.mxu0 %vm275_vm0, %v315_v51  ;;  %v309_v58 = vmul.f32 %v306_v37, %v284_v54  ;;  %v299_v59 = vpop.xlane.xlu2 %298  ;;  %v1903_v40 = vpop.eup %1902 }
  0xc4   : > { %v314_v61 = vmul.f32 %v306_v37, %v299_v59  ;;  %v545_v42 = vmul.f32 16.0, %v1903_v40  ;;  %vm549_vm3 = vweird.f32 %v1903_v40 }
  0xc5   : > { %v318_v62 = vsub.f32 %v2212_v6, %v310_v57  ;;  %v317_v2 = vsub.f32 %v2214_v7, %v309_v58  ;;  %v2313_v6 = vld [vmem:[%s2194_s13 + $0x68] sm:$0xff] }
  0xc6   : > { %1773 = vmatmul.msk.f32.vlgmr.msra.gmra.mxu0 %vm275_vm0, %v315_v51  ;;  %v322_v0 = vsub.f32 %v2216_v8, %v314_v61  ;;  %v514_v8 = vsel %vm471_vm1, %v2309_v3, 0.0  ;;  %v511_v15 = vsel %vm471_vm1, %v2313_v6, 0.0  ;;  %509 = vadd.xlane.f32.xlu2 %v508_v16  ;;  %v546_v43 = vsub.f32 1.0, %v545_v42 }
  0xc7   : > { %1775 = vmatpush.xpose.msk.msra.mxu1 %vm275_vm0, %v318_v62  ;;  %515 = vadd.xlane.f32.xlu0 %v514_v8 }
  0xc8   : > { %1783 = vmatpush.xpose.msk.msra.mxu3 %vm275_vm0, %v322_v0  ;;  %512 = vadd.xlane.f32.xlu1 %v511_v15  ;;  %v547_v44 = vmul.f32 %v1903_v40, %v546_v43 }
  0xca   : > { %v290_v4 = vpop.xlane.xlu0 %289  ;;  %v296_v5 = vpop.xlane.xlu1 %295  ;;  %v548_v46 = vadd.f32 %v1903_v40, %v547_v44 }
  0xcb   : > { %1776 = vmatpush.xpose.msk.msra.mxu1 %vm275_vm0, %v317_v2  ;;  %v311_v9 = vmul.f32 %v306_v37, %v290_v4  ;;  %v313_v7 = vmul.f32 %v306_v37, %v296_v5  ;;  %v2372_v37 = vld [vmem:[%s2194_s13 + $0xa0] sm:$0xff]  ;;  %v483_v48 = vpop.xlane.xlu2 %482 }
  0xcc   : > { %v532_v38 = vsel %vm471_vm1, %v2372_v37, 0.0 }
  0xcd   : > { %v319_v11 = vsub.f32 %v2224_v12, %v311_v9  ;;  %v321_v14 = vsub.f32 %v2226_v13, %v313_v7  ;;  %v2332_v12 = vld [vmem:[%s2194_s13 + $0x98] sm:$0xff] }
  0xce   : > { %1774 = vmatmul.msk.f32.gmra.mxu0 %vm275_vm0, %v316_v47  ;;  %1777 = vmatmul.msk.f32.vlgmr.msra.gmra.mxu1 %vm275_vm0, %v317_v2  ;;  %v529_v13 = vsel %vm471_vm1, %v2332_v12, 0.0  ;;  %v2376_v47 = vsel %vm549_vm3, %v1903_v40, %v548_v46  ;;  %vm1581_vm3 = vcmask 1047559  }
  0xcf   : > { %1780 = vmatpush.xpose.msk.msra.mxu2 %vm275_vm0, %v319_v11  ;;  %1784 = vmatpush.xpose.msk.msra.mxu3 %vm275_vm0, %v321_v14 }
  0xd0   : > { %530 = vadd.xlane.f32.xlu0 %v529_v13  ;;  %527 = vadd.xlane.f32.xlu1 %v526_v21 }
  0xd1   : > { %524 = vadd.xlane.f32.xlu2 %v523_v22 }
  0xd2   : > { %1781 = vmatmul.msk.f32.vlgmr.msra.gmra.mxu2 %vm275_vm0, %v319_v11  ;;  %1785 = vmatmul.msk.f32.vlgmr.msra.gmra.mxu3 %vm275_vm0, %v321_v14  ;;  %v477_v51 = vpop.xlane.xlu1 %476  ;;  %v480_v57 = vpop.xlane.xlu0 %479 }
  0xd3   : > { %v552_v53 = vmul.f32 %v2376_v47, %v477_v51  ;;  %v474_v55 = vpop.xlane.xlu2 %473  ;;  %v553_v59 = vmul.f32 %v2376_v47, %v480_v57 }
  0xd4   : > { %v551_v58 = vmul.f32 %v2376_v47, %v474_v55 }
  0xd5   : > { %v2386_v54 = vsub.f32 %v2238_v20, %v552_v53  ;;  %v2396_v61 = vsub.f32 %v2246_v24, %v553_v59 }
  0xd6   : > { %1778 = vmatmul.msk.f32.gmra.mxu1 %vm275_vm0, %v318_v62 }
  0xd7   : > { %619 = vmatpush.msrb.mxu0 %v2386_v54  ;;  %648 = vmatpush.msrb.mxu1 %v2386_v54 }
  0xd8   : > { %521 = vadd.xlane.f32.xlu0 %v520_v26  ;;  %542 = vadd.xlane.f32.xlu1 %v541_v30 }
  0xd9   : > { %539 = vadd.xlane.f32.xlu2 %v538_v31 }
  0xda   : > { %1782 = vmatmul.msk.f32.gmra.mxu2 %vm275_vm0, %v320_v49  ;;  %1786 = vmatmul.msk.f32.gmra.mxu3 %vm275_vm0, %v322_v0  ;;  %v554_v49 = vmul.f32 %v2376_v47, %v483_v48  ;;  %v495_v20 = vpop.xlane.xlu0 %494  ;;  %v492_v1 = vpop.xlane.xlu1 %491 }
  0xdb   : > { %v558_v62 = vmul.f32 %v2376_v47, %v495_v20  ;;  %v489_v0 = vpop.xlane.xlu2 %488  ;;  %v557_v4 = vmul.f32 %v2376_v47, %v492_v1 }
  0xdc   : > { %v2380_v50 = vsub.f32 %v2233_v17, %v554_v49  ;;  %v2393_v17 = vsub.f32 %v2243_v23, %v551_v58  ;;  %v556_v23 = vmul.f32 %v2376_v47, %v489_v0 }
  0xdd   : > { %v2404_v63 = vsub.f32 %v2253_v28, %v558_v62  ;;  %v2417_v28 = vsub.f32 %v2261_v33, %v557_v4 }
  0xde   : > { %671 = vmatpush.msrb.mxu2 %v2380_v50  ;;  %694 = vmatpush.msrb.mxu3 %v2380_v50  ;;  %v2410_v24 = vsub.f32 %v2258_v32, %v556_v23 }
  0xdf   : > { %620 = vmatpush.msrb.mxu0 %v2393_v17  ;;  %649 = vmatpush.msrb.mxu1 %v2393_v17 }
  0xe0   : > { %536 = vadd.xlane.f32.xlu0 %v535_v36  ;;  %533 = vadd.xlane.f32.xlu1 %v532_v38 }
  0xe1   : > { %672 = vmatpush.msrb.mxu2 %v2396_v61  ;;  %695 = vmatpush.msrb.mxu3 %v2396_v61 }
  0xe2   : > { %v486_v2 = vpop.xlane.xlu0 %485  ;;  %717 = vmatpush.msra.mxu0 %v2410_v24  ;;  %740 = vmatpush.msra.mxu1 %v2410_v24  ;;  %v507_v32 = vpop.xlane.xlu1 %506 }
  0xe3   : > { %763 = vmatpush.msra.mxu2 %v2404_v63  ;;  %786 = vmatpush.msra.mxu3 %v2404_v63  ;;  %v555_v5 = vmul.f32 %v2376_v47, %v486_v2  ;;  %v562_v7 = vmul.f32 %v2376_v47, %v507_v32  ;;  %v504_v14 = vpop.xlane.xlu2 %503 }
  0xe4   : > { %v561_v15 = vmul.f32 %v2376_v47, %v504_v14 }
  0xe5   : > { %v2420_v8 = vsub.f32 %v2266_v35, %v555_v5  ;;  %764 = vmatpush.msra.mxu2 %v2417_v28  ;;  %787 = vmatpush.msra.mxu3 %v2417_v28  ;;  %v2431_v13 = vsub.f32 %v2273_v41, %v562_v7 }
  0xe6   : > { %v2439_v26 = vsub.f32 %v2276_v45, %v561_v15 }
  0xe7   : > { %718 = vmatpush.msra.mxu0 %v2420_v8  ;;  %741 = vmatpush.msra.mxu1 %v2420_v8 }
  0xea   : > { %v501_v9 = vpop.xlane.xlu0 %500  ;;  %v498_v33 = vpop.xlane.xlu1 %497 }
  0xeb   : > { %v560_v11 = vmul.f32 %v2376_v47, %v501_v9  ;;  %v559_v35 = vmul.f32 %v2376_v47, %v498_v33 }
  0xed   : > { %v2434_v21 = vsub.f32 %v2287_v52, %v560_v11  ;;  %v2442_v30 = vsub.f32 %v2293_v56, %v559_v35 }
 0x131   : > { %v519_v41 = vpop.xlane.xlu2 %518 }
 0x132   : > { %v566_v40 = vmul.f32 %v2376_v47, %v519_v41 }
 0x134   : > { %v2475_v49 = vsub.f32 %v2297_v60, %v566_v40 }
 0x139   : > { %v510_v38 = vpop.xlane.xlu2 %509 }
 0x13a   : > { %v516_v39 = vpop.xlane.xlu0 %515  ;;  %v563_v43 = vmul.f32 %v2376_v47, %v510_v38 }
 0x13b   : > { %v513_v36 = vpop.xlane.xlu1 %512  ;;  %v565_v44 = vmul.f32 %v2376_v47, %v516_v39 }
 0x13c   : > { %v564_v42 = vmul.f32 %v2376_v47, %v513_v36  ;;  %v2485_v53 = vsub.f32 %v2319_v10, %v563_v43 }
 0x13d   : > { %v2488_v55 = vsub.f32 %v2309_v3, %v565_v44 }
 0x13e   : > { %v2478_v51 = vsub.f32 %v2313_v6, %v564_v42 }
 0x143   : > { %v346_v16 = vpop.f32.mrf.mxu0  ;;  %v531_v60 = vpop.xlane.xlu0 %530 }
 0x144   : > { %v2436_v22 = vmul.f32 0.06666667, %v346_v16  ;;  %v525_v6 = vpop.xlane.xlu2 %524  ;;  %v528_v10 = vpop.xlane.xlu1 %527  ;;  %v570_v57 = vmul.f32 %v2376_v47, %v531_v60 }
 0x145   : > { %v568_v58 = vmul.f32 %v2376_v47, %v525_v6  ;;  %v569_v20 = vmul.f32 %v2376_v47, %v528_v10 }
 0x146   : > { %1787 = vmatmul.msk.f32.vlgmr.msrb.gmra.mxu0 %vm471_vm1, %v2436_v22  ;;  %1791 = vmatmul.msk.f32.vlgmr.msrb.gmra.mxu2 %vm471_vm1, %v2436_v22  ;;  %v2515_v62 = vsub.f32 %v2332_v12, %v570_v57 }
 0x147   : > { %855 = vmatpush.msrb.mxu2 %v2431_v13  ;;  %809 = vmatpush.msrb.mxu0 %v2434_v21  ;;  %v2518_v0 = vsub.f32 %v2342_v19, %v568_v58  ;;  %v2528_v1 = vsub.f32 %v2339_v18, %v569_v20 }
 0x149   : > { %810 = vmatpush.msrb.mxu0 %v2442_v30  ;;  %856 = vmatpush.msrb.mxu2 %v2439_v26 }
 0x14b   : > { %v349_v45 = vpop.f32.mrf.mxu0  ;;  %v375_v52 = vpop.f32.mrf.mxu1 }
 0x14c   : > { %v2452_v31 = vmul.f32 0.06666667, %v349_v45  ;;  %v2454_v56 = vmul.f32 0.06666667, %v375_v52  ;;  %v522_v3 = vpop.xlane.xlu0 %521  ;;  %v543_v12 = vpop.xlane.xlu1 %542 }
 0x14d   : > { %v567_v59 = vmul.f32 %v2376_v47, %v522_v3  ;;  %v540_v18 = vpop.xlane.xlu2 %539  ;;  %v574_v4 = vmul.f32 %v2376_v47, %v543_v12 }
 0x14e   : > { %1788 = vmatmul.msk.f32.gmra.mxu0 %vm471_vm1, %v2452_v31  ;;  %1789 = vmatmul.msk.f32.vlgmr.msrb.gmra.mxu1 %vm471_vm1, %v2454_v56  ;;  %v573_v9 = vmul.f32 %v2376_v47, %v540_v18 }
 0x14f   : > { %1792 = vmatmul.msk.f32.gmra.mxu2 %vm471_vm1, %v2452_v31  ;;  %1793 = vmatmul.msk.f32.vlgmr.msrb.gmra.mxu3 %vm471_vm1, %v2454_v56  ;;  %v2525_v23 = vsub.f32 %v2350_v25, %v567_v59  ;;  %v2555_v11 = vsub.f32 %v2357_v27, %v574_v4 }
 0x150   : > { %878 = vmatpush.msrb.mxu3 %v2431_v13  ;;  %832 = vmatpush.msrb.mxu1 %v2434_v21  ;;  %v2564_v33 = vsub.f32 %v2360_v29, %v573_v9 }
 0x152   : > { %879 = vmatpush.msrb.mxu3 %v2439_v26  ;;  %833 = vmatpush.msrb.mxu1 %v2442_v30 }
 0x153   : > { %v378_v46 = vpop.f32.mrf.mxu1 }
 0x154   : > { %v2472_v48 = vmul.f32 0.06666667, %v378_v46  ;;  %v537_v19 = vpop.xlane.xlu0 %536  ;;  %v534_v2 = vpop.xlane.xlu1 %533 }
 0x155   : > { %v404_v25 = vpop.f32.mrf.mxu2  ;;  %v572_v5 = vmul.f32 %v2376_v47, %v537_v19  ;;  %v571_v7 = vmul.f32 %v2376_v47, %v534_v2  ;;  %v433_v35 = vpop.f32.mrf.mxu3 }
 0x156   : > { %1790 = vmatmul.msk.f32.gmra.mxu1 %vm471_vm1, %v2472_v48  ;;  %1795 = vmatmul.msk.f32.vlgmr.msra.gmra.mxu0 %vm471_vm1, %v2436_v22  ;;  %v443_v32 = vmul.f32 0.06666667, %v404_v25 }
 0x157   : > { %1794 = vmatmul.msk.f32.gmra.mxu3 %vm471_vm1, %v2472_v48  ;;  %1799 = vmatmul.msk.f32.vlgmr.msra.gmra.mxu2 %vm471_vm1, %v2436_v22  ;;  %v2558_v14 = vsub.f32 %v2367_v34, %v572_v5  ;;  %v2567_v15 = vsub.f32 %v2372_v37, %v571_v7  ;;  %v445_v34 = vmul.f32 0.06666667, %v433_v35 }
 0x158   : > { %959 = vmatpush.msra.mxu2 %v2475_v49  ;;  %907 = vmatpush.msra.mxu0 %v2478_v51 }
 0x15a   : > { %908 = vmatpush.msra.mxu0 %v2485_v53  ;;  %960 = vmatpush.msra.mxu2 %v2488_v55 }
 0x15d   : > { %v407_v27 = vpop.f32.mrf.mxu2  ;;  %v436_v37 = vpop.f32.mrf.mxu3 }
 0x15e   : > { %1796 = vmatmul.msk.f32.gmra.mxu0 %vm471_vm1, %v2452_v31  ;;  %1797 = vmatmul.msk.f32.vlgmr.msra.gmra.mxu1 %vm471_vm1, %v2454_v56  ;;  %v444_v29 = vmul.f32 0.06666667, %v407_v27  ;;  %v446_v47 = vmul.f32 0.06666667, %v436_v37 }
 0x15f   : > { %1800 = vmatmul.msk.f32.gmra.mxu2 %vm471_vm1, %v2452_v31  ;;  %1801 = vmatmul.msk.f32.vlgmr.msra.gmra.mxu3 %vm471_vm1, %v2454_v56 }
 0x160   : > { %982 = vmatpush.msra.mxu3 %v2475_v49  ;;  %936 = vmatpush.msra.mxu1 %v2478_v51 }
 0x162   : > { %983 = vmatpush.msra.mxu3 %v2488_v55  ;;  %937 = vmatpush.msra.mxu1 %v2485_v53 }
 0x166   : > { %1798 = vmatmul.msk.f32.gmra.mxu1 %vm471_vm1, %v2472_v48  ;;  %1803 = vmatmul.msk.f32.vlgmr.msrb.gmra.mxu0 %vm471_vm1, %v2436_v22 }
 0x167   : > { %1802 = vmatmul.msk.f32.gmra.mxu3 %vm471_vm1, %v2472_v48  ;;  %1807 = vmatmul.msk.f32.vlgmr.msrb.gmra.mxu2 %vm471_vm1, %v2436_v22 }
 0x168   : > { %1051 = vmatpush.msrb.mxu2 %v2515_v62  ;;  %1005 = vmatpush.msrb.mxu0 %v2518_v0 }
 0x16a   : > { %1006 = vmatpush.msrb.mxu0 %v2525_v23  ;;  %1052 = vmatpush.msrb.mxu2 %v2528_v1 }
 0x16e   : > { %1804 = vmatmul.msk.f32.gmra.mxu0 %vm471_vm1, %v2452_v31  ;;  %1805 = vmatmul.msk.f32.vlgmr.msrb.gmra.mxu1 %vm471_vm1, %v2454_v56 }
 0x16f   : > { %1808 = vmatmul.msk.f32.gmra.mxu2 %vm471_vm1, %v2452_v31  ;;  %1809 = vmatmul.msk.f32.vlgmr.msrb.gmra.mxu3 %vm471_vm1, %v2454_v56 }
 0x170   : > { %1074 = vmatpush.msrb.mxu3 %v2515_v62  ;;  %1028 = vmatpush.msrb.mxu1 %v2518_v0 }
 0x172   : > { %1075 = vmatpush.msrb.mxu3 %v2528_v1  ;;  %1029 = vmatpush.msrb.mxu1 %v2525_v23 }
 0x176   : > { %1806 = vmatmul.msk.f32.gmra.mxu1 %vm471_vm1, %v2472_v48  ;;  %1811 = vmatmul.msk.f32.vlgmr.msra.gmra.mxu0 %vm471_vm1, %v443_v32 }
 0x177   : > { %1810 = vmatmul.msk.f32.gmra.mxu3 %vm471_vm1, %v2472_v48  ;;  %1815 = vmatmul.msk.f32.vlgmr.msra.gmra.mxu2 %vm471_vm1, %v443_v32 }
 0x178   : > { %1143 = vmatpush.msra.mxu2 %v2555_v11  ;;  %1097 = vmatpush.msra.mxu0 %v2558_v14 }
 0x17a   : > { %1098 = vmatpush.msra.mxu0 %v2567_v15  ;;  %1144 = vmatpush.msra.mxu2 %v2564_v33 }
 0x17e   : > { %1812 = vmatmul.msk.f32.gmra.mxu0 %vm471_vm1, %v444_v29  ;;  %1813 = vmatmul.msk.f32.vlgmr.msra.gmra.mxu1 %vm471_vm1, %v445_v34 }
 0x17f   : > { %1816 = vmatmul.msk.f32.gmra.mxu2 %vm471_vm1, %v444_v29  ;;  %1817 = vmatmul.msk.f32.vlgmr.msra.gmra.mxu3 %vm471_vm1, %v445_v34 }
 0x180   : > { %1166 = vmatpush.msra.mxu3 %v2555_v11  ;;  %1120 = vmatpush.msra.mxu1 %v2558_v14 }
 0x182   : > { %1167 = vmatpush.msra.mxu3 %v2564_v33  ;;  %1121 = vmatpush.msra.mxu1 %v2567_v15 }
 0x186   : > { %1814 = vmatmul.msk.f32.gmra.mxu1 %vm471_vm1, %v446_v47  ;;  %1819 = vmatmul.msk.f32.vlgmr.msrb.gmra.mxu0 %vm471_vm1, %v443_v32 }
 0x187   : > { %1818 = vmatmul.msk.f32.gmra.mxu3 %vm471_vm1, %v446_v47  ;;  %1823 = vmatmul.msk.f32.vlgmr.msrb.gmra.mxu2 %vm471_vm1, %v443_v32 }
 0x18e   : > { %1820 = vmatmul.msk.f32.gmra.mxu0 %vm471_vm1, %v444_v29  ;;  %1821 = vmatmul.msk.f32.vlgmr.msrb.gmra.mxu1 %vm471_vm1, %v445_v34 }
 0x18f   : > { %1824 = vmatmul.msk.f32.gmra.mxu2 %vm471_vm1, %v444_v29  ;;  %1825 = vmatmul.msk.f32.vlgmr.msrb.gmra.mxu3 %vm471_vm1, %v445_v34 }
 0x196   : > { %1822 = vmatmul.msk.f32.gmra.mxu1 %vm471_vm1, %v446_v47  ;;  %1827 = vmatmul.msk.f32.vlgmr.msra.gmra.mxu0 %vm471_vm1, %v443_v32 }
 0x197   : > { %1826 = vmatmul.msk.f32.gmra.mxu3 %vm471_vm1, %v446_v47  ;;  %1831 = vmatmul.msk.f32.vlgmr.msra.gmra.mxu2 %vm471_vm1, %v443_v32 }
 0x19e   : > { %1828 = vmatmul.msk.f32.gmra.mxu0 %vm471_vm1, %v444_v29  ;;  %1829 = vmatmul.msk.f32.vlgmr.msra.gmra.mxu1 %vm471_vm1, %v445_v34 }
 0x19f   : > { %1832 = vmatmul.msk.f32.gmra.mxu2 %vm471_vm1, %v444_v29  ;;  %1833 = vmatmul.msk.f32.vlgmr.msra.gmra.mxu3 %vm471_vm1, %v445_v34 }
 0x1a6   : > { %1830 = vmatmul.msk.f32.gmra.mxu1 %vm471_vm1, %v446_v47 }
 0x1a7   : > { %1834 = vmatmul.msk.f32.gmra.mxu3 %vm471_vm1, %v446_v47 }
 0x1c3   : > { %v622_v16 = vpop.f32.mrf.mxu0 }
 0x1c4   : > { %v1175_v41 = vmul.f32 %v622_v16, %v2393_v17 }
 0x1c6   : > { %v1223_v56 = vsel %vm471_vm1, %v1175_v41, 0.0 }
 0x1c9   : > { %v674_v22 = vpop.f32.mrf.mxu2 }
 0x1ca   : > { %v1179_v39 = vmul.f32 %v674_v22, %v2396_v61 }
 0x1cb   : > { %v625_v45 = vpop.f32.mrf.mxu0  ;;  %v651_v52 = vpop.f32.mrf.mxu1 }
 0x1cc   : > { %v1176_v31 = vmul.f32 %v625_v45, %v2386_v54  ;;  %v1177_v42 = vmul.f32 %v651_v52, %v2393_v17  ;;  %v1241_v10 = vsel %vm471_vm1, %v1179_v39, 0.0 }
 0x1ce   : > { %v1224_v36 = vsel %vm471_vm1, %v1176_v31, 0.0  ;;  %v1232_v59 = vsel %vm471_vm1, %v1177_v42, 0.0 }
 0x1cf   : > { %v1225_v38 = vadd.f32 %v1224_v36, %v1223_v56 }
 0x1d1   : > { %v1226_v40 = vrot.slane %v1225_v38, 4 }
 0x1d2   : > { %v677_v43 = vpop.f32.mrf.mxu2  ;;  %v697_v44 = vpop.f32.mrf.mxu3 }
 0x1d3   : > { %v1227_v46 = vadd.f32 %v1226_v40, %v1225_v38  ;;  %v1180_v48 = vmul.f32 %v677_v43, %v2380_v50  ;;  %v654_v60 = vpop.f32.mrf.mxu1  ;;  %v720_v6 = vpop.f32.mrf.mxu0  ;;  %v1181_v18 = vmul.f32 %v697_v44, %v2396_v61 }
 0x1d4   : > { %v1178_v3 = vmul.f32 %v654_v60, %v2386_v54  ;;  %v1183_v5 = vmul.f32 %v720_v6, %v2420_v8 }
 0x1d5   : > { %v1228_v57 = vrot.slane %v1227_v46, 2  ;;  %v1242_v58 = vsel %vm471_vm1, %v1180_v48, 0.0  ;;  %v1250_v37 = vsel %vm471_vm1, %v1181_v18, 0.0 }
 0x1d6   : > { %v1243_v20 = vadd.f32 %v1242_v58, %v1241_v10  ;;  %v1233_v12 = vsel %vm471_vm1, %v1178_v3, 0.0  ;;  %v1259_v61 = vsel %vm471_vm1, %v1183_v5, 0.0 }
 0x1d7   : > { %v1229_v17 = vadd.f32 %v1228_v57, %v1227_v46  ;;  %v1234_v19 = vadd.f32 %v1233_v12, %v1232_v59 }
 0x1d8   : > { %v1244_v25 = vrot.slane %v1243_v20, 4 }
 0x1d9   : > { %v1230_v2 = vrot.slane %v1229_v17, 1  ;;  %v1235_v4 = vrot.slane %v1234_v19, 4 }
 0x1da   : > { %v1245_v54 = vadd.f32 %v1244_v25, %v1243_v20  ;;  %v700_v32 = vpop.f32.mrf.mxu3  ;;  %v766_v9 = vpop.f32.mrf.mxu2 }
 0x1db   : > { %v1236_v7 = vadd.f32 %v1235_v4, %v1234_v19  ;;  %v1182_v35 = vmul.f32 %v700_v32, %v2380_v50  ;;  %v723_v27 = vpop.f32.mrf.mxu0  ;;  %v743_v29 = vpop.f32.mrf.mxu1  ;;  %v1231_v16 = vadd.f32 %v1230_v2, %v1229_v17  ;;  %v1187_v31 = vmul.f32 %v766_v9, %v2417_v28  ;;  %v2630_v17 = vld [vmem:[%s2844_s2] ss:$0 sm:$0xff] }
 0x1dc   : > { %v1246_v34 = vrot.slane %v1245_v54, 2  ;;  %v1184_v47 = vmul.f32 %v723_v27, %v2410_v24  ;;  %v1185_v43 = vmul.f32 %v743_v29, %v2420_v8 }
 0x1dd   : > { %v1237_v22 = vrot.slane %v1236_v7, 2  ;;  %v1251_v41 = vsel %vm471_vm1, %v1182_v35, 0.0  ;;  %vm1439_vm4 = vcmp.gt.f32.partialorder %v1231_v16, 0.0  ;;  %v1463_v44 = vmul.f32 0.2, %v1231_v16 }
 0x1de   : > { %v1247_v45 = vadd.f32 %v1246_v34, %v1245_v54  ;;  %v1252_v52 = vadd.f32 %v1251_v41, %v1250_v37  ;;  %v1260_v56 = vsel %vm471_vm1, %v1184_v47, 0.0  ;;  %v1277_v60 = vsel %vm471_vm1, %v1187_v31, 0.0 }
 0x1df   : > { %v1238_v50 = vadd.f32 %v1237_v22, %v1236_v7  ;;  %v1261_v36 = vadd.f32 %v1260_v56, %v1259_v61  ;;  %v1487_v5 = vsel %vm1439_vm4, %v1231_v16, %v1463_v44  ;;  %v1268_v7 = vsel %vm471_vm1, %v1185_v43, 0.0 }
 0x1e0   : > { %v1248_v38 = vrot.slane %v1247_v45, 1  ;;  %v1253_v39 = vrot.slane %v1252_v52, 4 }
 0x1e1   : > { %v1239_v40 = vrot.slane %v1238_v50, 1  ;;  %v1262_v42 = vrot.slane %v1261_v36, 4 }
 0x1e2   : > { %v1249_v46 = vadd.f32 %v1248_v38, %v1247_v45  ;;  %v1254_v48 = vadd.f32 %v1253_v39, %v1252_v52  ;;  %v769_v6 = vpop.f32.mrf.mxu2  ;;  %v789_v3 = vpop.f32.mrf.mxu3 }
 0x1e3   : > { %v1240_v10 = vadd.f32 %v1239_v40, %v1238_v50  ;;  %v1263_v57 = vadd.f32 %v1262_v42, %v1261_v36  ;;  %v1188_v58 = vmul.f32 %v769_v6, %v2404_v63  ;;  %v1189_v59 = vmul.f32 %v789_v3, %v2417_v28  ;;  %v746_v20 = vpop.f32.mrf.mxu1  ;;  %v812_v12 = vpop.f32.mrf.mxu0 }
 0x1e4   : > { %vm1441_vm5 = vcmp.gt.f32.partialorder %v1249_v46, 0.0  ;;  %v1465_v8 = vmul.f32 0.2, %v1249_v46  ;;  %v1255_v19 = vrot.slane %v1254_v48, 2  ;;  %v1186_v25 = vmul.f32 %v746_v20, %v2410_v24 }
 0x1e5   : > { %vm1440_vm6 = vcmp.gt.f32.partialorder %v1240_v10, 0.0  ;;  %v1464_v18 = vmul.f32 0.2, %v1240_v10  ;;  %v1264_v2 = vrot.slane %v1263_v57, 2  ;;  %v1278_v4 = vsel %vm471_vm1, %v1188_v58, 0.0 }
 0x1e6   : > { %v1256_v28 = vadd.f32 %v1255_v19, %v1254_v48  ;;  %v1279_v54 = vadd.f32 %v1278_v4, %v1277_v60  ;;  %v1489_v32 = vsel %vm1441_vm5, %v1249_v46, %v1465_v8  ;;  %v1269_v35 = vsel %vm471_vm1, %v1186_v25, 0.0 }
 0x1e7   : > { %v1265_v9 = vadd.f32 %v1264_v2, %v1263_v57  ;;  %v1488_v27 = vsel %vm1440_vm6, %v1240_v10, %v1464_v18  ;;  %v1270_v37 = vadd.f32 %v1269_v35, %v1268_v7  ;;  %v1514_v24 = vmul.f32 %v2630_v17, %v1487_v5 }
 0x1e8   : > { %v1257_v29 = vrot.slane %v1256_v28, 1  ;;  %v1280_v34 = vrot.slane %v1279_v54, 4  ;;  %v1286_v22 = vsel %vm471_vm1, %v1189_v59, 0.0  ;;  %v2640_v16 = vmul.f32 %v2630_v17, %v1489_v32 }
 0x1e9   : > { %v1266_v47 = vrot.slane %v1265_v9, 1  ;;  %v1271_v45 = vrot.slane %v1270_v37, 4  ;;  %v1515_v56 = vmul.f32 %v2630_v17, %v1488_v27  ;;  %v1191_v36 = vmul.f32 %v812_v12, %v2442_v30 }
 0x1ea   : > { %v1258_v61 = vadd.f32 %v1257_v29, %v1256_v28  ;;  %v1281_v41 = vadd.f32 %v1280_v34, %v1279_v54  ;;  %v792_v52 = vpop.f32.mrf.mxu3  ;;  %v858_v31 = vpop.f32.mrf.mxu2  ;;  %v1565_v18 = vrot.slane %v2640_v16, 6 }
 0x1eb   : > { %v1267_v50 = vadd.f32 %v1266_v47, %v1265_v9  ;;  %v1190_v38 = vmul.f32 %v792_v52, %v2404_v63  ;;  %v815_v39 = vpop.f32.mrf.mxu0  ;;  %v835_v40 = vpop.f32.mrf.mxu1  ;;  %v1272_v44 = vadd.f32 %v1271_v45, %v1270_v37  ;;  %v1195_v60 = vmul.f32 %v858_v31, %v2439_v26 }
 0x1ec   : > { %vm1442_vm8 = vcmp.gt.f32.partialorder %v1258_v61, 0.0  ;;  %v1466_v42 = vmul.f32 0.2, %v1258_v61  ;;  %v1282_v43 = vrot.slane %v1281_v41, 2  ;;  %v1562_v58 = vrot.slane %v1515_v56, 7 }
 0x1ed   : > { %vm1443_vm9 = vcmp.gt.f32.partialorder %v1267_v50, 0.0  ;;  %v1467_v46 = vmul.f32 0.2, %v1267_v50  ;;  %v1287_v48 = vsel %vm471_vm1, %v1190_v38, 0.0  ;;  %v1273_v10 = vrot.slane %v1272_v44, 2 }
 0x1ee   : > { %v1490_v6 = vsel %vm1442_vm8, %v1258_v61, %v1466_v42  ;;  %v1283_v3 = vadd.f32 %v1282_v43, %v1281_v41  ;;  %v1288_v57 = vadd.f32 %v1287_v48, %v1286_v22  ;;  %v1192_v63 = vmul.f32 %v815_v39, %v2434_v21 }
 0x1ef   : > { %v1491_v59 = vsel %vm1443_vm9, %v1267_v50, %v1467_v46  ;;  %v1193_v20 = vmul.f32 %v835_v40, %v2442_v30  ;;  %v2650_v12 = vmul.f32 %v2630_v17, %v1490_v6  ;;  %v1274_v19 = vadd.f32 %v1273_v10, %v1272_v44 }
 0x1f0   : > { %v1284_v8 = vrot.slane %v1283_v3, 1  ;;  %v1289_v25 = vrot.slane %v1288_v57, 4  ;;  %v1295_v2 = vsel %vm471_vm1, %v1191_v36, 0.0  ;;  %v1313_v4 = vsel %vm471_vm1, %v1195_v60, 0.0 }
 0x1f1   : > { %v1296_v5 = vsel %vm471_vm1, %v1192_v63, 0.0  ;;  %v1275_v28 = vrot.slane %v1274_v19, 1  ;;  %v2657_v7 = vmul.f32 %v2630_v17, %v1491_v59  ;;  %v1304_v27 = vsel %vm471_vm1, %v1193_v20, 0.0 }
 0x1f2   : > { %v1290_v54 = vadd.f32 %v1289_v25, %v1288_v57  ;;  %v1297_v32 = vadd.f32 %v1296_v5, %v1295_v2  ;;  %v861_v9 = vpop.f32.mrf.mxu2  ;;  %v881_v30 = vpop.f32.mrf.mxu3  ;;  %v1285_v35 = vadd.f32 %v1284_v8, %v1283_v3  ;;  %v1564_v47 = vsel %vm1563_vm7, %v1562_v58, %v1514_v24 }
 0x1f3   : > { %v1196_v29 = vmul.f32 %v861_v9, %v2431_v13  ;;  %v838_v34 = vpop.f32.mrf.mxu1  ;;  %v910_v37 = vpop.f32.mrf.mxu0  ;;  %v1276_v22 = vadd.f32 %v1275_v28, %v1274_v19  ;;  %v1568_v41 = vrot.slane %v2650_v12, 5  ;;  %v1197_v52 = vmul.f32 %v881_v30, %v2439_v26 }
 0x1f4   : > { %v1291_v16 = vrot.slane %v1290_v54, 2  ;;  %v1298_v61 = vrot.slane %v1297_v32, 4  ;;  %v1194_v31 = vmul.f32 %v838_v34, %v2434_v21  ;;  %v1199_v56 = vmul.f32 %v910_v37, %v2485_v53 }
 0x1f5   : > { %v1314_v45 = vsel %vm471_vm1, %v1196_v29, 0.0  ;;  %vm1444_vm12 = vcmp.gt.f32.partialorder %v1276_v22, 0.0  ;;  %v1468_v50 = vmul.f32 0.2, %v1276_v22  ;;  %v1469_v39 = vmul.f32 0.2, %v1285_v35 }
 0x1f6   : > { %v1292_v36 = vadd.f32 %v1291_v16, %v1290_v54  ;;  %v1299_v38 = vadd.f32 %v1298_v61, %v1297_v32  ;;  %v1315_v24 = vadd.f32 %v1314_v45, %v1313_v4  ;;  %v1305_v40 = vsel %vm471_vm1, %v1194_v31, 0.0 }
 0x1f7   : > { %vm1445_vm14 = vcmp.gt.f32.partialorder %v1285_v35, 0.0  ;;  %v1306_v44 = vadd.f32 %v1305_v40, %v1304_v27  ;;  %v1492_v46 = vsel %vm1444_vm12, %v1276_v22, %v1468_v50  ;;  %v1322_v26 = vsel %vm471_vm1, %v1197_v52, 0.0 }
 0x1f8   : > { %v1293_v42 = vrot.slane %v1292_v36, 1  ;;  %v1300_v43 = vrot.slane %v1299_v38, 2  ;;  %v1316_v48 = vrot.slane %v1315_v24, 4  ;;  %v1567_v21 = vsel %vm1566_vm10, %v1565_v18, %v1564_v47 }
 0x1f9   : > { %v1571_v60 = vrot.slane %v2657_v7, 4  ;;  %v1307_v10 = vrot.slane %v1306_v44, 4  ;;  %v1331_v57 = vsel %vm471_vm1, %v1199_v56, 0.0  ;;  %v1493_v19 = vsel %vm1445_vm14, %v1285_v35, %v1469_v39 }
 0x1fa   : > { %v1294_v6 = vadd.f32 %v1293_v42, %v1292_v36  ;;  %v1301_v3 = vadd.f32 %v1300_v43, %v1299_v38  ;;  %v884_v58 = vpop.f32.mrf.mxu3  ;;  %v962_v59 = vpop.f32.mrf.mxu2  ;;  %v1317_v63 = vadd.f32 %v1316_v48, %v1315_v24  ;;  %v1519_v25 = vmul.f32 %v2630_v17, %v1492_v46 }
 0x1fb   : > { %v1198_v20 = vmul.f32 %v884_v58, %v2431_v13  ;;  %v913_v12 = vpop.f32.mrf.mxu0  ;;  %v939_v8 = vpop.f32.mrf.mxu1  ;;  %v1308_v2 = vadd.f32 %v1307_v10, %v1306_v44  ;;  %v1570_v5 = vsel %vm1569_vm11, %v1568_v41, %v1567_v21  ;;  %v1203_v32 = vmul.f32 %v962_v59, %v2488_v55 }
 0x1fc   : > { %v1302_v18 = vrot.slane %v1301_v3, 1  ;;  %v1200_v4 = vmul.f32 %v913_v12, %v2478_v51  ;;  %v1318_v28 = vrot.slane %v1317_v63, 2  ;;  %v1201_v13 = vmul.f32 %v939_v8, %v2485_v53 }
 0x1fd   : > { %v1323_v54 = vsel %vm471_vm1, %v1198_v20, 0.0  ;;  %v1309_v9 = vrot.slane %v1308_v2, 2  ;;  %vm1446_vm0 = vcmp.gt.f32.partialorder %v1294_v6, 0.0  ;;  %v1470_v29 = vmul.f32 0.2, %v1294_v6 }
 0x1fe   : > { %v1324_v30 = vadd.f32 %v1323_v54, %v1322_v26  ;;  %v1332_v7 = vsel %vm471_vm1, %v1200_v4, 0.0  ;;  %v1319_v35 = vadd.f32 %v1318_v28, %v1317_v63  ;;  %v2681_v34 = vadd.f32 %v1302_v18, %v1301_v3 }
 0x1ff   : > { %v1333_v27 = vadd.f32 %v1332_v7, %v1331_v57  ;;  %v1310_v37 = vadd.f32 %v1309_v9, %v1308_v2  ;;  %v1520_v22 = vmul.f32 %v2630_v17, %v1493_v19  ;;  %v1494_v41 = vsel %vm1446_vm0, %v1294_v6, %v1470_v29 }
 0x200   : > { %v1325_v47 = vrot.slane %v1324_v30, 4  ;;  %v1320_v16 = vrot.slane %v1319_v35, 1  ;;  %v1573_v53 = vsel %vm1572_vm13, %v1571_v60, %v1570_v5  ;;  %v1349_v52 = vsel %vm471_vm1, %v1203_v32, 0.0 }
 0x201   : > { %v1334_v61 = vrot.slane %v1333_v27, 4  ;;  %v1340_v31 = vsel %vm471_vm1, %v1201_v13, 0.0  ;;  %v1574_v36 = vrot.slane %v1519_v25, 3  ;;  %v1311_v39 = vrot.slane %v1310_v37, 1 }
 0x202   : > { %v1326_v45 = vadd.f32 %v1325_v47, %v1324_v30  ;;  %v965_v56 = vpop.f32.mrf.mxu2  ;;  %v985_v50 = vpop.f32.mrf.mxu3  ;;  %v2687_v38 = vadd.f32 %v1320_v16, %v1319_v35  ;;  %v2691_v44 = vmul.f32 0.2, %v2681_v34  ;;  %v1521_v26 = vmul.f32 %v2630_v17, %v1494_v41 }
 0x203   : > { %v1335_v24 = vadd.f32 %v1334_v61, %v1333_v27  ;;  %v1204_v40 = vmul.f32 %v965_v56, %v2475_v49  ;;  %v942_v42 = vpop.f32.mrf.mxu1  ;;  %v1008_v43 = vpop.f32.mrf.mxu0  ;;  %v1205_v6 = vmul.f32 %v985_v50, %v2488_v55  ;;  %v1577_v3 = vrot.slane %v1520_v22, 2 }
 0x204   : > { %v1327_v46 = vrot.slane %v1326_v45, 2  ;;  %v1202_v48 = vmul.f32 %v942_v42, %v2478_v51  ;;  %v1207_v58 = vmul.f32 %v1008_v43, %v2525_v23  ;;  %v1576_v59 = vsel %vm1575_vm15, %v1574_v36, %v1573_v53 }
 0x205   : > { %v1336_v21 = vrot.slane %v1335_v24, 2  ;;  %v1350_v60 = vsel %vm471_vm1, %v1204_v40, 0.0  ;;  %v2700_v63 = vmul.f32 0.2, %v2687_v38  ;;  %v1312_v20 = vadd.f32 %v1311_v39, %v1310_v37 }
 0x206   : > { %v1328_v10 = vadd.f32 %v1327_v46, %v1326_v45  ;;  %v1351_v57 = vadd.f32 %v1350_v60, %v1349_v52  ;;  %v1341_v51 = vsel %vm471_vm1, %v1202_v48, 0.0  ;;  %v1580_v18 = vrot.slane %v1521_v26, 1 }
 0x207   : > { %v1337_v12 = vadd.f32 %v1336_v21, %v1335_v24  ;;  %v1342_v25 = vadd.f32 %v1341_v51, %v1340_v31  ;;  %v1358_v55 = vsel %vm471_vm1, %v1205_v6, 0.0  ;;  %v1579_v4 = vsel %vm1578_vm2, %v1577_v3, %v1576_v59 }
 0x208   : > { %v1329_v8 = vrot.slane %v1328_v10, 1  ;;  %v1352_v19 = vrot.slane %v1351_v57, 4  ;;  %v1367_v54 = vsel %vm471_vm1, %v1207_v58, 0.0  ;;  %v1582_v32 = vsel %vm1581_vm3, %v1580_v18, %v1579_v4 }
 0x209   : > { %v1338_v2 = vrot.slane %v1337_v12, 1  ;;  %v1343_v28 = vrot.slane %v1342_v25, 4  ;;  %v1613_v35 = vsel %vm471_vm1, %v1582_v32, 0.0  ;;  %vm1448_vm5 = vcmp.gt.f32.partialorder %v1312_v20, 0.0 }
 0x20a   : > { %v1353_v5 = vadd.f32 %v1352_v19, %v1351_v57  ;;  %v988_v13 = vpop.f32.mrf.mxu3  ;;  %v1054_v9 = vpop.f32.mrf.mxu2  ;;  %v2707_v30 = vadd.f32 %v1329_v8, %v1328_v10  ;;  %1614 = vadd.xlane.f32.xlu2 %v1613_v35  ;;  %v1472_v50 = vmul.f32 0.2, %v1312_v20  ;;  %vm1447_vm6 = vcmp.gt.f32.partialorder %v2681_v34, 0.0 }
 0x20b   : > { %v1339_v7 = vadd.f32 %v1338_v2, %v1337_v12  ;;  %v1206_v27 = vmul.f32 %v988_v13, %v2475_v49  ;;  %v1011_v29 = vpop.f32.mrf.mxu0  ;;  %v1031_v37 = vpop.f32.mrf.mxu1  ;;  %v1344_v22 = vadd.f32 %v1343_v28, %v1342_v25  ;;  %v1211_v16 = vmul.f32 %v1054_v9, %v2528_v1 }
 0x20c   : > { %v1354_v47 = vrot.slane %v1353_v5, 2  ;;  %v1208_v61 = vmul.f32 %v1011_v29, %v2518_v0  ;;  %v1209_v45 = vmul.f32 %v1031_v37, %v2525_v23  ;;  %vm1449_vm8 = vcmp.gt.f32.partialorder %v2687_v38, 0.0 }
 0x20d   : > { %vm1451_vm4 = vcmp.gt.f32.partialorder %v1339_v7, 0.0  ;;  %v1475_v41 = vmul.f32 0.2, %v1339_v7  ;;  %v1359_v53 = vsel %vm471_vm1, %v1206_v27, 0.0  ;;  %v1345_v31 = vrot.slane %v1344_v22, 2 }
 0x20e   : > { %v1355_v52 = vadd.f32 %v1354_v47, %v1353_v5  ;;  %v1360_v56 = vadd.f32 %v1359_v53, %v1358_v55  ;;  %v1368_v49 = vsel %vm471_vm1, %v1208_v61, 0.0  ;;  %v1385_v43 = vsel %vm471_vm1, %v1211_v16, 0.0 }
 0x20f   : > { %v1369_v36 = vadd.f32 %v1368_v49, %v1367_v54  ;;  %v1346_v24 = vadd.f32 %v1345_v31, %v1344_v22  ;;  %v1499_v42 = vsel %vm1451_vm4, %v1339_v7, %v1475_v41  ;;  %v1376_v46 = vsel %vm471_vm1, %v1209_v45, 0.0 }
 0x210   : > { %v1356_v39 = vrot.slane %v1355_v52, 1  ;;  %v1361_v40 = vrot.slane %v1360_v56, 4  ;;  %vm1450_vm9 = vcmp.gt.f32.partialorder %v2707_v30, 0.0  ;;  %v1474_v58 = vmul.f32 0.2, %v2707_v30 }
 0x211   : > { %v1370_v23 = vrot.slane %v1369_v36, 4  ;;  %v1347_v26 = vrot.slane %v1346_v24, 1  ;;  %v1496_v59 = vsel %vm1448_vm5, %v1312_v20, %v1472_v50  ;;  %v1495_v29 = vsel %vm1447_vm6, %v2681_v34, %v2691_v44 }
 0x212   : > { %v1357_v48 = vadd.f32 %v1356_v39, %v1355_v52  ;;  %v1362_v21 = vadd.f32 %v1361_v40, %v1360_v56  ;;  %v1057_v60 = vpop.f32.mrf.mxu2  ;;  %v1077_v6 = vpop.f32.mrf.mxu3  ;;  %v1497_v37 = vsel %vm1449_vm8, %v2687_v38, %v2700_v63  ;;  %v1498_v61 = vsel %vm1450_vm9, %v2707_v30, %v1474_v58 }
 0x213   : > { %v1371_v3 = vadd.f32 %v1370_v23, %v1369_v36  ;;  %v1212_v10 = vmul.f32 %v1057_v60, %v2515_v62  ;;  %v1034_v57 = vpop.f32.mrf.mxu1  ;;  %v1348_v51 = vadd.f32 %v1347_v26, %v1346_v24  ;;  %v1100_v19 = vpop.f32.mrf.mxu0  ;;  %v1213_v2 = vmul.f32 %v1077_v6, %v2528_v1 }
 0x214   : > { %vm1453_vm12 = vcmp.gt.f32.partialorder %v1357_v48, 0.0  ;;  %v1477_v12 = vmul.f32 0.2, %v1357_v48  ;;  %v1363_v8 = vrot.slane %v1362_v21, 2  ;;  %v1210_v55 = vmul.f32 %v1034_v57, %v2518_v0 }
 0x215   : > { %v1372_v25 = vrot.slane %v1371_v3, 2  ;;  %v1386_v18 = vsel %vm471_vm1, %v1212_v10, 0.0  ;;  %vm1452_vm14 = vcmp.gt.f32.partialorder %v1348_v51, 0.0  ;;  %v1476_v5 = vmul.f32 0.2, %v1348_v51 }
 0x216   : > { %v1501_v4 = vsel %vm1453_vm12, %v1357_v48, %v1477_v12  ;;  %v1364_v28 = vadd.f32 %v1363_v8, %v1362_v21  ;;  %v1387_v32 = vadd.f32 %v1386_v18, %v1385_v43  ;;  %v1377_v13 = vsel %vm471_vm1, %v1210_v55, 0.0 }
 0x217   : > { %v2729_v54 = vmul.f32 %v2630_v17, %v1501_v4  ;;  %v1373_v20 = vadd.f32 %v1372_v25, %v1371_v3  ;;  %v1500_v9 = vsel %vm1452_vm14, %v1348_v51, %v1476_v5  ;;  %v1378_v35 = vadd.f32 %v1377_v13, %v1376_v46 }
 0x218   : > { %v1365_v7 = vrot.slane %v1364_v28, 1  ;;  %v1215_v27 = vmul.f32 %v1100_v19, %v2567_v15  ;;  %v2734_v1 = vmul.f32 %v2630_v17, %v1500_v9  ;;  %v1388_v0 = vrot.slane %v1387_v32, 4 }
 0x219   : > { %v1374_v22 = vrot.slane %v1373_v20, 1  ;;  %v1379_v16 = vrot.slane %v1378_v35, 4  ;;  %v2748_v45 = vmul.f32 %v2630_v17, %v1499_v42  ;;  %v1394_v34 = vsel %vm471_vm1, %v1213_v2, 0.0 }
 0x21a   : > { %v1366_v47 = vadd.f32 %v1365_v7, %v1364_v28  ;;  %v1080_v41 = vpop.f32.mrf.mxu3  ;;  %v1146_v53 = vpop.f32.mrf.mxu2  ;;  %v1389_v52 = vadd.f32 %v1388_v0, %v1387_v32  ;;  %v1523_v44 = vmul.f32 %v2630_v17, %v1496_v59  ;;  %v1591_v38 = vrot.slane %v2729_v54, 6 }
 0x21b   : > { %v1123_v31 = vpop.f32.mrf.mxu1  ;;  %v1380_v63 = vadd.f32 %v1379_v16, %v1378_v35  ;;  %v1403_v56 = vsel %vm471_vm1, %v1215_v27, 0.0  ;;  %v1524_v49 = vmul.f32 %v2630_v17, %v1497_v37  ;;  %v1589_v30 = vrot.slane %v2734_v1, 7  ;;  %v1103_v43 = vpop.f32.mrf.mxu0 }
 0x21c   : > { %v1390_v50 = vrot.slane %v1389_v52, 2  ;;  %v1522_v36 = vmul.f32 %v2630_v17, %v1495_v29  ;;  %v1525_v39 = vmul.f32 %v2630_v17, %v1498_v61  ;;  %vm1454_vm0 = vcmp.gt.f32.partialorder %v1366_v47, 0.0 }
 0x21d   : > { %v1375_v24 = vadd.f32 %v1374_v22, %v1373_v20  ;;  %v1381_v40 = vrot.slane %v1380_v63, 2  ;;  %v1583_v42 = vrot.slane %v1523_v44, 7  ;;  %v1478_v23 = vmul.f32 0.2, %v1366_v47 }
 0x21e   : > { %v1391_v46 = vadd.f32 %v1390_v50, %v1389_v52  ;;  %v1585_v48 = vrot.slane %v1524_v49, 6  ;;  %v1587_v26 = vrot.slane %v1525_v39, 5  ;;  %vm1616_vm4 = vcmask 125952  }
 0x21f   : > { %v1382_v21 = vadd.f32 %v1381_v40, %v1380_v63  ;;  %v1584_v60 = vsel %vm1563_vm7, %v1583_v42, %v1522_v36  ;;  %v1214_v6 = vmul.f32 %v1080_v41, %v2515_v62  ;;  %v1219_v57 = vmul.f32 %v1146_v53, %v2564_v33 }
 0x220   : > { %v1392_v3 = vrot.slane %v1391_v46, 1  ;;  %v1586_v10 = vsel %vm1566_vm10, %v1585_v48, %v1584_v60  ;;  %v1216_v58 = vmul.f32 %v1103_v43, %v2558_v14  ;;  %vm1455_vm5 = vcmp.gt.f32.partialorder %v1375_v24, 0.0 }
 0x221   : > { %v1383_v59 = vrot.slane %v1382_v21, 1  ;;  %v1588_v12 = vsel %vm1569_vm11, %v1587_v26, %v1586_v10  ;;  %v1395_v51 = vsel %vm471_vm1, %v1214_v6, 0.0  ;;  %v1502_v25 = vsel %vm1454_vm0, %v1366_v47, %v1478_v23 }
 0x222   : > { %v1149_v8 = vpop.f32.mrf.mxu2  ;;  %v1169_v19 = vpop.f32.mrf.mxu3  ;;  %v1479_v18 = vmul.f32 0.2, %v1375_v24  ;;  %v1617_v62 = vsel %vm1616_vm4, %v1588_v12, 0.0  ;;  %v1396_v2 = vadd.f32 %v1395_v51, %v1394_v34  ;;  %v1404_v5 = vsel %vm471_vm1, %v1216_v58, 0.0 }
 0x223   : > { %v1126_v55 = vpop.f32.mrf.mxu1  ;;  %v1384_v4 = vadd.f32 %v1383_v59, %v1382_v21  ;;  %1618 = vadd.xlane.f32.xlu0 %v1617_v62  ;;  %v1217_v28 = vmul.f32 %v1123_v31, %v2567_v15  ;;  %v1220_v20 = vmul.f32 %v1149_v8, %v2555_v11  ;;  %v1393_v32 = vadd.f32 %v1392_v3, %v1391_v46 }
 0x224   : > { %v1397_v13 = vrot.slane %v1396_v2, 4  ;;  %v1421_v9 = vsel %vm471_vm1, %v1219_v57, 0.0  ;;  %v1405_v7 = vadd.f32 %v1404_v5, %v1403_v56  ;;  %v1218_v0 = vmul.f32 %v1126_v55, %v2558_v14 }
 0x225   : > { %vm1456_vm6 = vcmp.gt.f32.partialorder %v1384_v4, 0.0  ;;  %v1480_v35 = vmul.f32 0.2, %v1384_v4  ;;  %v1422_v27 = vsel %vm471_vm1, %v1220_v20, 0.0  ;;  %v1503_v29 = vsel %vm1455_vm5, %v1375_v24, %v1479_v18 }
 0x226   : > { %v1398_v37 = vadd.f32 %v1397_v13, %v1396_v2  ;;  %v1406_v47 = vrot.slane %v1405_v7, 4  ;;  %v1423_v22 = vadd.f32 %v1422_v27, %v1421_v9  ;;  %v1529_v15 = vmul.f32 %v2630_v17, %v1502_v25 }
 0x227   : > { %v1412_v16 = vsel %vm471_vm1, %v1217_v28, 0.0  ;;  %v1413_v61 = vsel %vm471_vm1, %v1218_v0, 0.0  ;;  %v1504_v41 = vsel %vm1456_vm6, %v1384_v4, %v1480_v35  ;;  %v1481_v31 = vmul.f32 0.2, %v1393_v32 }
 0x228   : > { %v1399_v53 = vrot.slane %v1398_v37, 2  ;;  %v1407_v52 = vadd.f32 %v1406_v47, %v1405_v7  ;;  %v1424_v34 = vrot.slane %v1423_v22, 4  ;;  %v1414_v44 = vadd.f32 %v1413_v61, %v1412_v16 }
 0x229   : > { %v1221_v63 = vmul.f32 %v1169_v19, %v2564_v33  ;;  %vm1457_vm8 = vcmp.gt.f32.partialorder %v1393_v32, 0.0  ;;  %v1530_v56 = vmul.f32 %v2630_v17, %v1503_v29  ;;  %v1531_v40 = vmul.f32 %v2630_v17, %v1504_v41 }
 0x22a   : > { %v1172_v14 = vpop.f32.mrf.mxu3  ;;  %v1400_v49 = vadd.f32 %v1399_v53, %v1398_v37  ;;  %v1408_v50 = vrot.slane %v1407_v52, 2  ;;  %v1425_v36 = vadd.f32 %v1424_v34, %v1423_v22  ;;  %v1415_v39 = vrot.slane %v1414_v44, 4 }
 0x22b   : > { %v1222_v24 = vmul.f32 %v1172_v14, %v2555_v11  ;;  %v1590_v42 = vsel %vm1563_vm7, %v1589_v30, %v2748_v45  ;;  %v1593_v43 = vrot.slane %v1529_v15, 5  ;;  %v1430_v26 = vsel %vm471_vm1, %v1221_v63, 0.0 }
 0x22c   : > { %v1401_v23 = vrot.slane %v1400_v49, 1  ;;  %v1409_v33 = vadd.f32 %v1408_v50, %v1407_v52  ;;  %v1426_v46 = vrot.slane %v1425_v36, 2  ;;  %v1416_v48 = vadd.f32 %v1415_v39, %v1414_v44 }
 0x22d   : > { %v1431_v21 = vsel %vm471_vm1, %v1222_v24, 0.0  ;;  %v1505_v60 = vsel %vm1457_vm8, %v1393_v32, %v1481_v31  ;;  %v1592_v1 = vsel %vm1566_vm10, %v1591_v38, %v1590_v42  ;;  %v1595_v57 = vrot.slane %v1530_v56, 4 }
 0x22e   : > { %v1402_v6 = vadd.f32 %v1401_v23, %v1400_v49  ;;  %v1427_v11 = vadd.f32 %v1426_v46, %v1425_v36  ;;  %v1417_v3 = vrot.slane %v1416_v48, 2  ;;  %v1410_v10 = vrot.slane %v1409_v33, 1 }
 0x22f   : > { %v1432_v45 = vadd.f32 %v1431_v21, %v1430_v26  ;;  %v1594_v30 = vsel %vm1569_vm11, %v1593_v43, %v1592_v1  ;;  %v1597_v12 = vrot.slane %v1531_v40, 3  ;;  %v1532_v19 = vmul.f32 %v2630_v17, %v1505_v60 }
 0x230   : > { %v1428_v58 = vrot.slane %v1427_v11, 1  ;;  %v1418_v59 = vadd.f32 %v1417_v3, %v1416_v48  ;;  %vm1458_vm9 = vcmp.gt.f32.partialorder %v1402_v6, 0.0  ;;  %v1482_v8 = vmul.f32 0.2, %v1402_v6 }
 0x231   : > { %v1433_v51 = vrot.slane %v1432_v45, 4  ;;  %v1411_v62 = vadd.f32 %v1410_v10, %v1409_v33  ;;  %v1596_v38 = vsel %vm1572_vm13, %v1595_v57, %v1594_v30  ;;  %v1599_v20 = vrot.slane %v1532_v19, 2 }
 0x232   : > { %v1429_v25 = vadd.f32 %v1428_v58, %v1427_v11  ;;  %v1419_v18 = vrot.slane %v1418_v59, 1  ;;  %v1506_v54 = vsel %vm1458_vm9, %v1402_v6, %v1482_v8  ;;  %v1598_v5 = vsel %vm1575_vm15, %v1597_v12, %v1596_v38 }
 0x233   : > { %v1434_v2 = vadd.f32 %v1433_v51, %v1432_v45  ;;  %v1533_v4 = vmul.f32 %v2630_v17, %v1506_v54  ;;  %v1483_v7 = vmul.f32 0.2, %v1411_v62  ;;  %v1600_v27 = vsel %vm1578_vm2, %v1599_v20, %v1598_v5 }
 0x234   : > { %v1420_v55 = vadd.f32 %v1419_v18, %v1418_v59  ;;  %v1485_v32 = vmul.f32 0.2, %v1429_v25  ;;  %vm1461_vm14 = vcmp.gt.f32.partialorder %v1429_v25, 0.0  ;;  %vm1459_vm0 = vcmp.gt.f32.partialorder %v1411_v62, 0.0 }
 0x235   : > { %v1435_v28 = vrot.slane %v1434_v2, 2  ;;  %v1601_v9 = vrot.slane %v1533_v4, 1  ;;  %v1507_v61 = vsel %vm1459_vm0, %v1411_v62, %v1483_v7  ;;  %v1635_v39 = vlaneseq }
 0x236   : > { %vm1460_vm12 = vcmp.gt.f32.partialorder %v1420_v55, 0.0  ;;  %v1484_v13 = vmul.f32 0.2, %v1420_v55  ;;  %v1509_v15 = vsel %vm1461_vm14, %v1429_v25, %v1485_v32  ;;  %v1534_v34 = vmul.f32 %v2630_v17, %v1507_v61 }
 0x237   : > { %v1436_v35 = vadd.f32 %v1435_v28, %v1434_v2  ;;  %v1602_v0 = vsel %vm1581_vm3, %v1601_v9, %v1600_v27  ;;  %v1536_v52 = vmul.f32 %v2630_v17, %v1509_v15  ;;  %v1636_v42 = vand.u32 127, %v1635_v39 }
 0x238   : > { %v1508_v29 = vsel %vm1460_vm12, %v1420_v55, %v1484_v13  ;;  %v1620_v47 = vsel %vm471_vm1, %v1602_v0, 0.0  ;;  %v1626_v43 = vstv %s265_s7  ;;  %vm1640_vm1 = vcmask 130112  }
 0x239   : > { %v1437_v37 = vrot.slane %v1436_v35, 1  ;;  %v1535_v22 = vmul.f32 %v2630_v17, %v1508_v29  ;;  %1621 = vadd.xlane.f32.xlu1 %v1620_v47  ;;  %v1605_v14 = vrot.slane %v1536_v52, 6 }
 0x23b   : > { %v1438_v16 = vadd.f32 %v1437_v37, %v1436_v35  ;;  %v1603_v41 = vrot.slane %v1535_v22, 7 }
 0x23d   : > { %vm1462_vm13 = vcmp.gt.f32.partialorder %v1438_v16, 0.0  ;;  %v1486_v53 = vmul.f32 0.2, %v1438_v16  ;;  %v1604_v63 = vsel %vm1563_vm7, %v1603_v41, %v1534_v34 }
 0x23e   : > { %v1606_v49 = vsel %vm1566_vm10, %v1605_v14, %v1604_v63  ;;  %vm1647_vm10 = vcmask 91136  }
 0x23f   : > { %v1510_v44 = vsel %vm1462_vm13, %v1438_v16, %v1486_v53 }
 0x240   : > { %v1537_v31 = vmul.f32 %v2630_v17, %v1510_v44  ;;  %v1638_v17 = vadd.s32 4294967288, %v1636_v42 }
 0x242   : > { %v1607_v56 = vrot.slane %v1537_v31, 5 }
 0x244   : > { %v1608_v50 = vsel %vm1569_vm11, %v1607_v56, %v1606_v49 }
 0x245   : > { %v1623_v36 = vsel %vm1616_vm4, %v1608_v50, 0.0 }
 0x246   : > { %1624 = vadd.xlane.f32.xlu2 %v1623_v36 }
 0x27d   : > { %v1615_v24 = vpop.xlane.xlu2 %1614 }
 0x27e   : > { %v1627_v46 = vadd.f32 %v1626_v43, %v1615_v24 }
 0x280   : > { %v1637_v6 = vperm.slane %v1627_v46, %v1636_v42 }
 0x296   : > { %v1619_v40 = vpop.xlane.xlu0 %1618 }
 0x297   : > { %v1628_v33 = vadd.f32 %v1626_v43, %v1619_v40 }
 0x299   : > { %v1639_v21 = vperm.slane %v1628_v33, %v1638_v17 }
 0x29b   : > { %v1641_v1 = vsel %vm1640_vm1, %v1639_v21, %v1637_v6 }
 0x2ac   : > { %v1622_v23 = vpop.xlane.xlu1 %1621 }
 0x2ad   : > { %v1629_v48 = vadd.f32 %v1626_v43, %v1622_v23 }
 0x2af   : > { %v1642_v11 = vperm.slane %v1629_v48, %v1636_v42 }
 0x2b9   : > { %v1625_v26 = vpop.xlane.xlu2 %1624 }
 0x2ba   : > { %v1630_v60 = vadd.f32 %v1626_v43, %v1625_v26 }
 0x2bc   : > { %v1643_v3 = vperm.slane %v1630_v60, %v1638_v17 }
 0x2be   : > { %v1644_v10 = vsel %vm1640_vm1, %v1643_v3, %v1642_v11 }
 0x2bf   : > { %v1645_v45 = vsel %vm1563_vm7, %v1644_v10, %v1641_v1 }
 0x2c0   : > { %1648 = vst.msk [vmem:[%s262_s10] sm:$0x3] %vm1647_vm10, %v1645_v45 }
 0x2c1   : > { %1991 = shalt.err (!%p1988_p0)
}
 0x2c2   : > { %1848 = dma.vmem_to_hbm [thread:$0]  (%p2118_p11), %s1663_s12, 32, %s1665_s14, %s1650_s3  }
 0x2c3 PF: > { %s1676_s30 = sand.u32 1, %s2022_s17   ;;  %p2856_p1 = scmp.ge.s32.totalorder %s2034_s20, 2 }
 0x2c4   : > { %s1677_s13 = scalar_lea.sflag [#allocation5], %s1676_s30 }
 0x2c5   : > { %p1858_p4 = pnand %p2856_p1, %p2122_p12 }
 0x2c7   : > { %p1859_p7 = pneg %p1858_p4 }
 0x2c9   : > { %2017 = dma.done.wait (%p1859_p7), %s1677_s13, 32  }
 0x2ca   : > { %2019 = vsyncadd (%p1859_p7), %s1677_s13, 4294967264  ;;  %s2857_s27 = sld [smem:[#allocation12_spill]]  ;;  %p21_p5 = scmp.ge.s32.totalorder %s2093_s22, 4  }
 0x2cb   : > { %s2858_s17 = smov %s2026_s18  ;;  %s2859_s18 = smov %s2030_s19 }
 0x2cc   : > { %s2861_s20 = smov %s2093_s22  ;;  %23 = sbr.rel (!%p21_p5) target bundleno = 10 (0xa), region = 94 }
 0x2d0   : > { %s2860_s19 = smov %s2857_s27 }
 0x2d1   :  { %1683 = vsyncpa [#allocation4], 1 }
 0x2d2   :  { %1685 = vsyncpa [#allocation4 + $0x1], 1 }
 0x2d3   :  { %1686 = vsyncpa [#allocation7], 1 }
 0x2d4   :  { %1688 = vsyncpa [#allocation7 + $0x1], 1 }
 0x2d5   :  { %1689 = vsyncpa [#allocation5], 1 }
 0x2d6   :  { %1691 = vsyncpa [#allocation5 + $0x1], 1 }

</bundles_post_ra>
